<compile_context>
chip_gen: v5e
topology: v5e:2x2
jax: 0.10.0
libtpu: 0.0.40
codegen_flags: <defaults>
</compile_context>

<pallas_src>
import functools

import jax
import jax.numpy as jnp
from jax.experimental import pallas as pl
from jax.experimental.pallas import tpu as pltpu


def _resblock_kernel(x_ref, w1_ref, b1_ref, g1_ref, be1_ref, gs1_ref,
                     w2_ref, b2_ref, g2_ref, be2_ref, gs2_ref, m_ref, o_ref,
                     *, H, W, cg1, cg2, eps, residual):
    """One batch element per grid step.

    x_ref  : (1, Cin, H*W)       input image, flat NCHW (lane-dense)
    wX_ref : (CoutX, 9*CinX)     im2col conv weights (taps k-major, cin minor)
    bX/gX/beX_ref : (CoutX, 1)   conv bias / GN gamma / GN beta (column vectors)
    gsX_ref: (CoutX, CoutX)      0/1 "same GroupNorm group" matrix
    m_ref  : (9, 1, H*W)         per-tap halo validity masks (f32)
    o_ref  : (1, Cout, H*W)      output, flat NCHW
    """
    HW = H * W
    x = x_ref[0].astype(jnp.float32)                     # (Cin, HW)
    masks = [m_ref[k] for k in range(9)]                 # each (1, HW)

    def conv3x3_gn(inp, w_ref, b_ref, g_ref, be_ref, gs_ref, cg):
        # --- im2col slab (9*Cin, HW): circular lane rolls per tap; wrapped
        # elements land on positions zeroed by the halo masks.
        pieces = []
        k = 0
        for dh in (-1, 0, 1):
            for dw in (-1, 0, 1):
                shift = (-(dh * W + dw)) % HW
                piece = inp if shift == 0 else pltpu.roll(inp, shift=shift, axis=1)
                if not (dh == 0 and dw == 0):
                    piece = piece * masks[k]
                pieces.append(piece)
                k += 1
        slab = jnp.concatenate(pieces, axis=0)                          # (9*Cin, HW)

        # --- single K=9*Cin MXU matmul + bias (lane-dense (Cout, HW) result).
        acc = jnp.dot(w_ref[...], slab, preferred_element_type=jnp.float32)
        acc = acc + b_ref[...]                                          # (Cout, HW)

        # --- GroupNorm, two-pass centered variance.  Group sums via a small
        # matmul against the 0/1 same-group matrix (channels stay on sublanes).
        inv_count = jnp.float32(1.0 / (cg * HW))
        gs = gs_ref[...]
        gsum = jnp.dot(gs, acc, preferred_element_type=jnp.float32)     # per-group sums
        mean_c = jnp.sum(gsum, axis=1, keepdims=True) * inv_count       # (Cout, 1)
        cen = acc - mean_c
        gsq = jnp.dot(gs, cen * cen, preferred_element_type=jnp.float32)
        var_c = jnp.sum(gsq, axis=1, keepdims=True) * inv_count         # (Cout, 1)
        inv_std = jax.lax.rsqrt(var_c + jnp.float32(eps))
        return cen * inv_std * g_ref[...] + be_ref[...]                 # (Cout, HW)

    h = conv3x3_gn(x, w1_ref, b1_ref, g1_ref, be1_ref, gs1_ref, cg1)
    y = conv3x3_gn(h, w2_ref, b2_ref, g2_ref, be2_ref, gs2_ref, cg2)
    if residual:
        y = y + x
    o_ref[0] = y.astype(o_ref.dtype)


def resblock_forward(x_nchw, w1, b1, g1, be1, w2, b2, g2, be2, *,
                     groups=8, eps=1e-5, residual=False):
    """Fused ResBlock forward. x_nchw: (N, Cin, H, W) like the PyTorch module."""
    N, Cin, H, W = x_nchw.shape
    HW = H * W
    Cmid = w1.shape[-1]
    Cout = w2.shape[-1]
    assert Cmid % groups == 0 and Cout % groups == 0, "GroupNorm needs C % groups == 0"
    assert (not residual) or Cin == Cout, "residual add needs inp_ch == out_ch"

    # Free (contiguous) reshape: flat NCHW is already the lane-dense layout.
    x_flat = x_nchw.reshape(N, Cin, HW)

    # Im2col weights (Cout, 9*Cin): rows taps-major / cin-minor, matching the
    # kernel's (dh, dw) loop order.  w is stored HWIO (3, 3, Cin, Cout).
    w1m = w1.reshape(9 * Cin, Cmid).T.astype(jnp.float32)
    w2m = w2.reshape(9 * Cmid, Cout).T.astype(jnp.float32)

    def col(v):
        return v.reshape(-1, 1).astype(jnp.float32)

    def group_same(C):
        cg = C // groups        # contiguous channel grouping (matches PyTorch GroupNorm)
        c = jnp.arange(C)
        return (c[:, None] // cg == c[None, :] // cg).astype(jnp.float32)

    # Halo masks: valid(h+dh, w+dw), same tap ordering as the kernel loop.
    hh = jnp.arange(H)[:, None]
    ww = jnp.arange(W)[None, :]
    masks = jnp.stack(
        [((hh + dh >= 0) & (hh + dh < H) & (ww + dw >= 0) & (ww + dw < W))
         .reshape(1, HW)
         for dh in (-1, 0, 1) for dw in (-1, 0, 1)],
        axis=0).astype(jnp.float32)                                    # (9, 1, HW)

    kernel = functools.partial(
        _resblock_kernel, H=H, W=W,
        cg1=Cmid // groups, cg2=Cout // groups, eps=eps, residual=residual)

    # TODO(synk): when N == 1 on v7x, add a parallel H-row-tile grid axis (with a
    # 1-row halo) so both TensorCores get work; with N >= 2 the batch axis suffices.
    y_flat = pl.pallas_call(
        kernel,
        out_shape=jax.ShapeDtypeStruct((N, Cout, HW), x_nchw.dtype),
        grid=(N,),
        in_specs=[
            pl.BlockSpec((1, Cin, HW), lambda b: (b, 0, 0)),       # x (flat NCHW)
            pl.BlockSpec((Cmid, 9 * Cin), lambda b: (0, 0)),       # w1 (im2col)
            pl.BlockSpec((Cmid, 1), lambda b: (0, 0)),             # b1
            pl.BlockSpec((Cmid, 1), lambda b: (0, 0)),             # gamma1
            pl.BlockSpec((Cmid, 1), lambda b: (0, 0)),             # beta1
            pl.BlockSpec((Cmid, Cmid), lambda b: (0, 0)),          # group matrix 1
            pl.BlockSpec((Cout, 9 * Cmid), lambda b: (0, 0)),      # w2 (im2col)
            pl.BlockSpec((Cout, 1), lambda b: (0, 0)),             # b2
            pl.BlockSpec((Cout, 1), lambda b: (0, 0)),             # gamma2
            pl.BlockSpec((Cout, 1), lambda b: (0, 0)),             # beta2
            pl.BlockSpec((Cout, Cout), lambda b: (0, 0)),          # group matrix 2
            pl.BlockSpec((9, 1, HW), lambda b: (0, 0, 0)),         # halo masks
        ],
        out_specs=pl.BlockSpec((1, Cout, HW), lambda b: (b, 0, 0)),
        compiler_params=pltpu.CompilerParams(
            dimension_semantics=("parallel",)),
    )(x_flat, w1m, col(b1), col(g1), col(be1), group_same(Cmid),
      w2m, col(b2), col(g2), col(be2), group_same(Cout), masks)

    # Free reshape back to NCHW.
    return y_flat.reshape(N, Cout, H, W)


class ResBlockPallas:
    """Pallas port of ResBlock: Conv3x3 -> GroupNorm(8) -> Conv3x3 -> GroupNorm(8)."""

    def __init__(self, inp_ch, out_ch, mid_ch=None, residual=False, key=None):
        self.residual = residual
        if not mid_ch:
            mid_ch = out_ch
        if key is None:
            key = jax.random.PRNGKey(0)
        ks = jax.random.split(key, 8)
        # Conv weights stored HWIO (3, 3, Cin, Cout); deterministic synthetic init.
        self.w1 = 0.1 * jax.random.normal(ks[0], (3, 3, inp_ch, mid_ch), jnp.float32)
        self.b1 = 0.1 * jax.random.normal(ks[1], (mid_ch,), jnp.float32)
        self.g1 = 1.0 + 0.1 * jax.random.normal(ks[2], (mid_ch,), jnp.float32)
        self.be1 = 0.1 * jax.random.normal(ks[3], (mid_ch,), jnp.float32)
        self.w2 = 0.1 * jax.random.normal(ks[4], (3, 3, mid_ch, out_ch), jnp.float32)
        self.b2 = 0.1 * jax.random.normal(ks[5], (out_ch,), jnp.float32)
        self.g2 = 1.0 + 0.1 * jax.random.normal(ks[6], (out_ch,), jnp.float32)
        self.be2 = 0.1 * jax.random.normal(ks[7], (out_ch,), jnp.float32)

    def __call__(self, x_nchw):
        return resblock_forward(
            x_nchw, self.w1, self.b1, self.g1, self.be1,
            self.w2, self.b2, self.g2, self.be2,
            groups=8, eps=1e-5, residual=self.residual)


def _ref_forward(block, x_nchw):
    """Pure-JAX reference matching the PyTorch module semantics."""
    x = jnp.transpose(x_nchw, (0, 2, 3, 1))

    def conv(x, w, b):
        y = jax.lax.conv_general_dilated(
            x, w, window_strides=(1, 1), padding="SAME",
            dimension_numbers=("NHWC", "HWIO", "NHWC"),
            precision=jax.lax.Precision.HIGHEST)
        return y + b

    def gn(x, gamma, beta, G=8, eps=1e-5):
        N, H, W, C = x.shape
        xg = x.reshape(N, H, W, G, C // G)
        mean = xg.mean(axis=(1, 2, 4), keepdims=True)
        var = xg.var(axis=(1, 2, 4), keepdims=True)
        xg = (xg - mean) / jnp.sqrt(var + eps)
        return xg.reshape(N, H, W, C) * gamma + beta

    h = gn(conv(x, block.w1, block.b1), block.g1, block.be1)
    y = gn(conv(h, block.w2, block.b2), block.g2, block.be2)
    if block.residual:
        y = y + x
    return jnp.transpose(y, (0, 3, 1, 2))


if __name__ == "__main__":
    key = jax.random.PRNGKey(0)
    k_x, k_p = jax.random.split(key)

    N, C, H, W = 2, 16, 16, 16          # inp_ch = out_ch = 16 (divisible by 8 groups)
    x = jax.random.normal(k_x, (N, C, H, W), jnp.float32)   # NCHW, like PyTorch

    block = ResBlockPallas(inp_ch=C, out_ch=C, mid_ch=C, residual=True, key=k_p)

    out = jax.block_until_ready(block(x))
    ref = jax.block_until_ready(_ref_forward(block, x))

    assert out.shape == (N, C, H, W)
    err = float(jnp.max(jnp.abs(out - ref)))
    assert jnp.allclose(out, ref, atol=2e-2, rtol=2e-2), f"max abs err {err}"

    print("KERNEL_OK")
</pallas_src>

<mosaic_0001>
module attributes {stable_mosaic.version = 11 : i64} {
  func.func @_resblock_kernel(%arg0: i32, %arg1: memref<1x16x256xf32, #tpu.memory_space<vmem>>, %arg2: memref<16x144xf32, #tpu.memory_space<vmem>>, %arg3: memref<16x1xf32, #tpu.memory_space<vmem>>, %arg4: memref<16x1xf32, #tpu.memory_space<vmem>>, %arg5: memref<16x1xf32, #tpu.memory_space<vmem>>, %arg6: memref<16x16xf32, #tpu.memory_space<vmem>>, %arg7: memref<16x144xf32, #tpu.memory_space<vmem>>, %arg8: memref<16x1xf32, #tpu.memory_space<vmem>>, %arg9: memref<16x1xf32, #tpu.memory_space<vmem>>, %arg10: memref<16x1xf32, #tpu.memory_space<vmem>>, %arg11: memref<16x16xf32, #tpu.memory_space<vmem>>, %arg12: memref<9x1x256xf32, #tpu.memory_space<vmem>>, %arg13: memref<1x16x256xf32, #tpu.memory_space<vmem>>) attributes {dimension_semantics = [#tpu.dimension_semantics<parallel>], iteration_bounds = array<i64: 2>, scalar_prefetch = 0 : i64, scratch_operands = 0 : i64, tpu.core_type = #tpu.core_type<tc>, window_params = [{transform_indices = @transform_0, window_bounds = array<i64: 1, 16, 256>}, {pipeline_mode = #tpu.pipeline_mode<synchronous>, transform_indices = @transform_1, window_bounds = array<i64: 16, 144>}, {pipeline_mode = #tpu.pipeline_mode<synchronous>, transform_indices = @transform_2, window_bounds = array<i64: 16, 1>}, {pipeline_mode = #tpu.pipeline_mode<synchronous>, transform_indices = @transform_3, window_bounds = array<i64: 16, 1>}, {pipeline_mode = #tpu.pipeline_mode<synchronous>, transform_indices = @transform_4, window_bounds = array<i64: 16, 1>}, {pipeline_mode = #tpu.pipeline_mode<synchronous>, transform_indices = @transform_5, window_bounds = array<i64: 16, 16>}, {pipeline_mode = #tpu.pipeline_mode<synchronous>, transform_indices = @transform_6, window_bounds = array<i64: 16, 144>}, {pipeline_mode = #tpu.pipeline_mode<synchronous>, transform_indices = @transform_7, window_bounds = array<i64: 16, 1>}, {pipeline_mode = #tpu.pipeline_mode<synchronous>, transform_indices = @transform_8, window_bounds = array<i64: 16, 1>}, {pipeline_mode = #tpu.pipeline_mode<synchronous>, transform_indices = @transform_9, window_bounds = array<i64: 16, 1>}, {pipeline_mode = #tpu.pipeline_mode<synchronous>, transform_indices = @transform_10, window_bounds = array<i64: 16, 16>}, {pipeline_mode = #tpu.pipeline_mode<synchronous>, transform_indices = @transform_11, window_bounds = array<i64: 9, 1, 256>}, {transform_indices = @transform_12, window_bounds = array<i64: 1, 16, 256>}]} {
    %c0 = arith.constant 0 : index
    %c0_0 = arith.constant 0 : index
    %c0_1 = arith.constant 0 : index
    %0 = vector.load %arg1[%c0, %c0_0, %c0_1] : memref<1x16x256xf32, #tpu.memory_space<vmem>>, vector<1x16x256xf32>
    %1 = vector.shape_cast %0 : vector<1x16x256xf32> to vector<16x256xf32>
    %c0_2 = arith.constant 0 : index
    %c0_3 = arith.constant 0 : index
    %c0_4 = arith.constant 0 : index
    %2 = vector.load %arg12[%c0_2, %c0_3, %c0_4] : memref<9x1x256xf32, #tpu.memory_space<vmem>>, vector<1x1x256xf32>
    %3 = vector.shape_cast %2 : vector<1x1x256xf32> to vector<1x256xf32>
    %c1 = arith.constant 1 : index
    %c0_5 = arith.constant 0 : index
    %c0_6 = arith.constant 0 : index
    %4 = vector.load %arg12[%c1, %c0_5, %c0_6] : memref<9x1x256xf32, #tpu.memory_space<vmem>>, vector<1x1x256xf32>
    %5 = vector.shape_cast %4 : vector<1x1x256xf32> to vector<1x256xf32>
    %c2 = arith.constant 2 : index
    %c0_7 = arith.constant 0 : index
    %c0_8 = arith.constant 0 : index
    %6 = vector.load %arg12[%c2, %c0_7, %c0_8] : memref<9x1x256xf32, #tpu.memory_space<vmem>>, vector<1x1x256xf32>
    %7 = vector.shape_cast %6 : vector<1x1x256xf32> to vector<1x256xf32>
    %c3 = arith.constant 3 : index
    %c0_9 = arith.constant 0 : index
    %c0_10 = arith.constant 0 : index
    %8 = vector.load %arg12[%c3, %c0_9, %c0_10] : memref<9x1x256xf32, #tpu.memory_space<vmem>>, vector<1x1x256xf32>
    %9 = vector.shape_cast %8 : vector<1x1x256xf32> to vector<1x256xf32>
    %c5 = arith.constant 5 : index
    %c0_11 = arith.constant 0 : index
    %c0_12 = arith.constant 0 : index
    %10 = vector.load %arg12[%c5, %c0_11, %c0_12] : memref<9x1x256xf32, #tpu.memory_space<vmem>>, vector<1x1x256xf32>
    %11 = vector.shape_cast %10 : vector<1x1x256xf32> to vector<1x256xf32>
    %c6 = arith.constant 6 : index
    %c0_13 = arith.constant 0 : index
    %c0_14 = arith.constant 0 : index
    %12 = vector.load %arg12[%c6, %c0_13, %c0_14] : memref<9x1x256xf32, #tpu.memory_space<vmem>>, vector<1x1x256xf32>
    %13 = vector.shape_cast %12 : vector<1x1x256xf32> to vector<1x256xf32>
    %c7 = arith.constant 7 : index
    %c0_15 = arith.constant 0 : index
    %c0_16 = arith.constant 0 : index
    %14 = vector.load %arg12[%c7, %c0_15, %c0_16] : memref<9x1x256xf32, #tpu.memory_space<vmem>>, vector<1x1x256xf32>
    %15 = vector.shape_cast %14 : vector<1x1x256xf32> to vector<1x256xf32>
    %c8 = arith.constant 8 : index
    %c0_17 = arith.constant 0 : index
    %c0_18 = arith.constant 0 : index
    %16 = vector.load %arg12[%c8, %c0_17, %c0_18] : memref<9x1x256xf32, #tpu.memory_space<vmem>>, vector<1x1x256xf32>
    %17 = vector.shape_cast %16 : vector<1x1x256xf32> to vector<1x256xf32>
    %c17_i32 = arith.constant 17 : i32
    %18 = tpu.dynamic_rotate %1 by %c17_i32 dim 1 : vector<16x256xf32>, i32 -> vector<16x256xf32>
    %19 = vector.broadcast %3 : vector<1x256xf32> to vector<16x256xf32>
    %20 = arith.mulf %18, %19 : vector<16x256xf32>
    %c16_i32 = arith.constant 16 : i32
    %21 = tpu.dynamic_rotate %1 by %c16_i32 dim 1 : vector<16x256xf32>, i32 -> vector<16x256xf32>
    %22 = vector.broadcast %5 : vector<1x256xf32> to vector<16x256xf32>
    %23 = arith.mulf %21, %22 : vector<16x256xf32>
    %c15_i32 = arith.constant 15 : i32
    %24 = tpu.dynamic_rotate %1 by %c15_i32 dim 1 : vector<16x256xf32>, i32 -> vector<16x256xf32>
    %25 = vector.broadcast %7 : vector<1x256xf32> to vector<16x256xf32>
    %26 = arith.mulf %24, %25 : vector<16x256xf32>
    %c1_i32 = arith.constant 1 : i32
    %27 = tpu.dynamic_rotate %1 by %c1_i32 dim 1 : vector<16x256xf32>, i32 -> vector<16x256xf32>
    %28 = vector.broadcast %9 : vector<1x256xf32> to vector<16x256xf32>
    %29 = arith.mulf %27, %28 : vector<16x256xf32>
    %c255_i32 = arith.constant 255 : i32
    %30 = tpu.dynamic_rotate %1 by %c255_i32 dim 1 : vector<16x256xf32>, i32 -> vector<16x256xf32>
    %31 = vector.broadcast %11 : vector<1x256xf32> to vector<16x256xf32>
    %32 = arith.mulf %30, %31 : vector<16x256xf32>
    %c241_i32 = arith.constant 241 : i32
    %33 = tpu.dynamic_rotate %1 by %c241_i32 dim 1 : vector<16x256xf32>, i32 -> vector<16x256xf32>
    %34 = vector.broadcast %13 : vector<1x256xf32> to vector<16x256xf32>
    %35 = arith.mulf %33, %34 : vector<16x256xf32>
    %c240_i32 = arith.constant 240 : i32
    %36 = tpu.dynamic_rotate %1 by %c240_i32 dim 1 : vector<16x256xf32>, i32 -> vector<16x256xf32>
    %37 = vector.broadcast %15 : vector<1x256xf32> to vector<16x256xf32>
    %38 = arith.mulf %36, %37 : vector<16x256xf32>
    %c239_i32 = arith.constant 239 : i32
    %39 = tpu.dynamic_rotate %1 by %c239_i32 dim 1 : vector<16x256xf32>, i32 -> vector<16x256xf32>
    %40 = vector.broadcast %17 : vector<1x256xf32> to vector<16x256xf32>
    %41 = arith.mulf %39, %40 : vector<16x256xf32>
    %42 = tpu.concatenate %20, %23, %26, %29, %1, %32, %35, %38, %41 in 0 : vector<16x256xf32>, vector<16x256xf32>, vector<16x256xf32>, vector<16x256xf32>, vector<16x256xf32>, vector<16x256xf32>, vector<16x256xf32>, vector<16x256xf32>, vector<16x256xf32> -> vector<144x256xf32>
    %c0_19 = arith.constant 0 : index
    %c0_20 = arith.constant 0 : index
    %43 = vector.load %arg2[%c0_19, %c0_20] : memref<16x144xf32, #tpu.memory_space<vmem>>, vector<16x144xf32>
    %cst = arith.constant dense<0.000000e+00> : vector<16x256xf32>
    %44 = tpu.matmul %43, %42, %cst {dimension_numbers = #tpu.dot_dimension_numbers<[1], [0], [0], [1], [0, 0, 1, 1], [], []>} : vector<16x144xf32>, vector<144x256xf32>, vector<16x256xf32> -> vector<16x256xf32>
    %c0_21 = arith.constant 0 : index
    %c0_22 = arith.constant 0 : index
    %45 = vector.load %arg3[%c0_21, %c0_22] : memref<16x1xf32, #tpu.memory_space<vmem>>, vector<16x1xf32>
    %46 = vector.broadcast %45 : vector<16x1xf32> to vector<16x256xf32>
    %47 = arith.addf %44, %46 : vector<16x256xf32>
    %c0_23 = arith.constant 0 : index
    %c0_24 = arith.constant 0 : index
    %48 = vector.load %arg6[%c0_23, %c0_24] : memref<16x16xf32, #tpu.memory_space<vmem>>, vector<16x16xf32>
    %cst_25 = arith.constant dense<0.000000e+00> : vector<16x256xf32>
    %49 = tpu.matmul %48, %47, %cst_25 {dimension_numbers = #tpu.dot_dimension_numbers<[1], [0], [0], [1], [0, 0, 1, 1], [], []>} : vector<16x16xf32>, vector<16x256xf32>, vector<16x256xf32> -> vector<16x256xf32>
    %cst_26 = arith.constant dense<0.000000e+00> : vector<16xf32>
    %50 = vector.multi_reduction <add>, %49, %cst_26 [1] : vector<16x256xf32> to vector<16xf32>
    %51 = vector.shape_cast %50 : vector<16xf32> to vector<16x1xf32>
    %cst_27 = arith.constant 0.001953125 : f32
    %52 = vector.broadcast %cst_27 : f32 to vector<16x1xf32>
    %53 = arith.mulf %51, %52 : vector<16x1xf32>
    %54 = vector.broadcast %53 : vector<16x1xf32> to vector<16x256xf32>
    %55 = arith.subf %47, %54 : vector<16x256xf32>
    %56 = arith.mulf %55, %55 : vector<16x256xf32>
    %cst_28 = arith.constant dense<0.000000e+00> : vector<16x256xf32>
    %57 = tpu.matmul %48, %56, %cst_28 {dimension_numbers = #tpu.dot_dimension_numbers<[1], [0], [0], [1], [0, 0, 1, 1], [], []>} : vector<16x16xf32>, vector<16x256xf32>, vector<16x256xf32> -> vector<16x256xf32>
    %cst_29 = arith.constant dense<0.000000e+00> : vector<16xf32>
    %58 = vector.multi_reduction <add>, %57, %cst_29 [1] : vector<16x256xf32> to vector<16xf32>
    %59 = vector.shape_cast %58 : vector<16xf32> to vector<16x1xf32>
    %cst_30 = arith.constant 0.001953125 : f32
    %60 = vector.broadcast %cst_30 : f32 to vector<16x1xf32>
    %61 = arith.mulf %59, %60 : vector<16x1xf32>
    %cst_31 = arith.constant 9.99999974E-6 : f32
    %62 = vector.broadcast %cst_31 : f32 to vector<16x1xf32>
    %63 = arith.addf %61, %62 : vector<16x1xf32>
    %64 = math.rsqrt %63 : vector<16x1xf32>
    %65 = vector.broadcast %64 : vector<16x1xf32> to vector<16x256xf32>
    %66 = arith.mulf %55, %65 : vector<16x256xf32>
    %c0_32 = arith.constant 0 : index
    %c0_33 = arith.constant 0 : index
    %67 = vector.load %arg4[%c0_32, %c0_33] : memref<16x1xf32, #tpu.memory_space<vmem>>, vector<16x1xf32>
    %68 = vector.broadcast %67 : vector<16x1xf32> to vector<16x256xf32>
    %69 = arith.mulf %66, %68 : vector<16x256xf32>
    %c0_34 = arith.constant 0 : index
    %c0_35 = arith.constant 0 : index
    %70 = vector.load %arg5[%c0_34, %c0_35] : memref<16x1xf32, #tpu.memory_space<vmem>>, vector<16x1xf32>
    %71 = vector.broadcast %70 : vector<16x1xf32> to vector<16x256xf32>
    %72 = arith.addf %69, %71 : vector<16x256xf32>
    %c17_i32_36 = arith.constant 17 : i32
    %73 = tpu.dynamic_rotate %72 by %c17_i32_36 dim 1 : vector<16x256xf32>, i32 -> vector<16x256xf32>
    %74 = vector.broadcast %3 : vector<1x256xf32> to vector<16x256xf32>
    %75 = arith.mulf %73, %74 : vector<16x256xf32>
    %c16_i32_37 = arith.constant 16 : i32
    %76 = tpu.dynamic_rotate %72 by %c16_i32_37 dim 1 : vector<16x256xf32>, i32 -> vector<16x256xf32>
    %77 = vector.broadcast %5 : vector<1x256xf32> to vector<16x256xf32>
    %78 = arith.mulf %76, %77 : vector<16x256xf32>
    %c15_i32_38 = arith.constant 15 : i32
    %79 = tpu.dynamic_rotate %72 by %c15_i32_38 dim 1 : vector<16x256xf32>, i32 -> vector<16x256xf32>
    %80 = vector.broadcast %7 : vector<1x256xf32> to vector<16x256xf32>
    %81 = arith.mulf %79, %80 : vector<16x256xf32>
    %c1_i32_39 = arith.constant 1 : i32
    %82 = tpu.dynamic_rotate %72 by %c1_i32_39 dim 1 : vector<16x256xf32>, i32 -> vector<16x256xf32>
    %83 = vector.broadcast %9 : vector<1x256xf32> to vector<16x256xf32>
    %84 = arith.mulf %82, %83 : vector<16x256xf32>
    %c255_i32_40 = arith.constant 255 : i32
    %85 = tpu.dynamic_rotate %72 by %c255_i32_40 dim 1 : vector<16x256xf32>, i32 -> vector<16x256xf32>
    %86 = vector.broadcast %11 : vector<1x256xf32> to vector<16x256xf32>
    %87 = arith.mulf %85, %86 : vector<16x256xf32>
    %c241_i32_41 = arith.constant 241 : i32
    %88 = tpu.dynamic_rotate %72 by %c241_i32_41 dim 1 : vector<16x256xf32>, i32 -> vector<16x256xf32>
    %89 = vector.broadcast %13 : vector<1x256xf32> to vector<16x256xf32>
    %90 = arith.mulf %88, %89 : vector<16x256xf32>
    %c240_i32_42 = arith.constant 240 : i32
    %91 = tpu.dynamic_rotate %72 by %c240_i32_42 dim 1 : vector<16x256xf32>, i32 -> vector<16x256xf32>
    %92 = vector.broadcast %15 : vector<1x256xf32> to vector<16x256xf32>
    %93 = arith.mulf %91, %92 : vector<16x256xf32>
    %c239_i32_43 = arith.constant 239 : i32
    %94 = tpu.dynamic_rotate %72 by %c239_i32_43 dim 1 : vector<16x256xf32>, i32 -> vector<16x256xf32>
    %95 = vector.broadcast %17 : vector<1x256xf32> to vector<16x256xf32>
    %96 = arith.mulf %94, %95 : vector<16x256xf32>
    %97 = tpu.concatenate %75, %78, %81, %84, %72, %87, %90, %93, %96 in 0 : vector<16x256xf32>, vector<16x256xf32>, vector<16x256xf32>, vector<16x256xf32>, vector<16x256xf32>, vector<16x256xf32>, vector<16x256xf32>, vector<16x256xf32>, vector<16x256xf32> -> vector<144x256xf32>
    %c0_44 = arith.constant 0 : index
    %c0_45 = arith.constant 0 : index
    %98 = vector.load %arg7[%c0_44, %c0_45] : memref<16x144xf32, #tpu.memory_space<vmem>>, vector<16x144xf32>
    %cst_46 = arith.constant dense<0.000000e+00> : vector<16x256xf32>
    %99 = tpu.matmul %98, %97, %cst_46 {dimension_numbers = #tpu.dot_dimension_numbers<[1], [0], [0], [1], [0, 0, 1, 1], [], []>} : vector<16x144xf32>, vector<144x256xf32>, vector<16x256xf32> -> vector<16x256xf32>
    %c0_47 = arith.constant 0 : index
    %c0_48 = arith.constant 0 : index
    %100 = vector.load %arg8[%c0_47, %c0_48] : memref<16x1xf32, #tpu.memory_space<vmem>>, vector<16x1xf32>
    %101 = vector.broadcast %100 : vector<16x1xf32> to vector<16x256xf32>
    %102 = arith.addf %99, %101 : vector<16x256xf32>
    %c0_49 = arith.constant 0 : index
    %c0_50 = arith.constant 0 : index
    %103 = vector.load %arg11[%c0_49, %c0_50] : memref<16x16xf32, #tpu.memory_space<vmem>>, vector<16x16xf32>
    %cst_51 = arith.constant dense<0.000000e+00> : vector<16x256xf32>
    %104 = tpu.matmul %103, %102, %cst_51 {dimension_numbers = #tpu.dot_dimension_numbers<[1], [0], [0], [1], [0, 0, 1, 1], [], []>} : vector<16x16xf32>, vector<16x256xf32>, vector<16x256xf32> -> vector<16x256xf32>
    %cst_52 = arith.constant dense<0.000000e+00> : vector<16xf32>
    %105 = vector.multi_reduction <add>, %104, %cst_52 [1] : vector<16x256xf32> to vector<16xf32>
    %106 = vector.shape_cast %105 : vector<16xf32> to vector<16x1xf32>
    %cst_53 = arith.constant 0.001953125 : f32
    %107 = vector.broadcast %cst_53 : f32 to vector<16x1xf32>
    %108 = arith.mulf %106, %107 : vector<16x1xf32>
    %109 = vector.broadcast %108 : vector<16x1xf32> to vector<16x256xf32>
    %110 = arith.subf %102, %109 : vector<16x256xf32>
    %111 = arith.mulf %110, %110 : vector<16x256xf32>
    %cst_54 = arith.constant dense<0.000000e+00> : vector<16x256xf32>
    %112 = tpu.matmul %103, %111, %cst_54 {dimension_numbers = #tpu.dot_dimension_numbers<[1], [0], [0], [1], [0, 0, 1, 1], [], []>} : vector<16x16xf32>, vector<16x256xf32>, vector<16x256xf32> -> vector<16x256xf32>
    %cst_55 = arith.constant dense<0.000000e+00> : vector<16xf32>
    %113 = vector.multi_reduction <add>, %112, %cst_55 [1] : vector<16x256xf32> to vector<16xf32>
    %114 = vector.shape_cast %113 : vector<16xf32> to vector<16x1xf32>
    %cst_56 = arith.constant 0.001953125 : f32
    %115 = vector.broadcast %cst_56 : f32 to vector<16x1xf32>
    %116 = arith.mulf %114, %115 : vector<16x1xf32>
    %cst_57 = arith.constant 9.99999974E-6 : f32
    %117 = vector.broadcast %cst_57 : f32 to vector<16x1xf32>
    %118 = arith.addf %116, %117 : vector<16x1xf32>
    %119 = math.rsqrt %118 : vector<16x1xf32>
    %120 = vector.broadcast %119 : vector<16x1xf32> to vector<16x256xf32>
    %121 = arith.mulf %110, %120 : vector<16x256xf32>
    %c0_58 = arith.constant 0 : index
    %c0_59 = arith.constant 0 : index
    %122 = vector.load %arg9[%c0_58, %c0_59] : memref<16x1xf32, #tpu.memory_space<vmem>>, vector<16x1xf32>
    %123 = vector.broadcast %122 : vector<16x1xf32> to vector<16x256xf32>
    %124 = arith.mulf %121, %123 : vector<16x256xf32>
    %c0_60 = arith.constant 0 : index
    %c0_61 = arith.constant 0 : index
    %125 = vector.load %arg10[%c0_60, %c0_61] : memref<16x1xf32, #tpu.memory_space<vmem>>, vector<16x1xf32>
    %126 = vector.broadcast %125 : vector<16x1xf32> to vector<16x256xf32>
    %127 = arith.addf %124, %126 : vector<16x256xf32>
    %128 = arith.addf %127, %1 : vector<16x256xf32>
    %c0_62 = arith.constant 0 : index
    %c0_63 = arith.constant 0 : index
    %c0_64 = arith.constant 0 : index
    %129 = vector.load %arg13[%c0_62, %c0_63, %c0_64] : memref<1x16x256xf32, #tpu.memory_space<vmem>>, vector<1x16x256xf32>
    %130 = vector.shape_cast %129 : vector<1x16x256xf32> to vector<16x256xf32>
    %131 = vector.shape_cast %128 : vector<16x256xf32> to vector<1x16x256xf32>
    tpu.vector_store %arg13[%c0_62, %c0_63, %c0_64], %131 {strides = array<i32>} : memref<1x16x256xf32, #tpu.memory_space<vmem>>, vector<1x16x256xf32>,
    return
  }
  func.func @transform_0(%arg0: i32) -> (i32, i32, i32) {
    %c0_i32 = arith.constant 0 : i32
    %c0_i32_0 = arith.constant 0 : i32
    %c0_i32_1 = arith.constant 0 : i32
    return %arg0, %c0_i32, %c0_i32_0 : i32, i32, i32
  }
  func.func @transform_1(%arg0: i32) -> (i32, i32) {
    %c0_i32 = arith.constant 0 : i32
    %c0_i32_0 = arith.constant 0 : i32
    %c0_i32_1 = arith.constant 0 : i32
    return %c0_i32, %c0_i32_0 : i32, i32
  }
  func.func @transform_2(%arg0: i32) -> (i32, i32) {
    %c0_i32 = arith.constant 0 : i32
    %c0_i32_0 = arith.constant 0 : i32
    %c0_i32_1 = arith.constant 0 : i32
    return %c0_i32, %c0_i32_0 : i32, i32
  }
  func.func @transform_3(%arg0: i32) -> (i32, i32) {
    %c0_i32 = arith.constant 0 : i32
    %c0_i32_0 = arith.constant 0 : i32
    %c0_i32_1 = arith.constant 0 : i32
    return %c0_i32, %c0_i32_0 : i32, i32
  }
  func.func @transform_4(%arg0: i32) -> (i32, i32) {
    %c0_i32 = arith.constant 0 : i32
    %c0_i32_0 = arith.constant 0 : i32
    %c0_i32_1 = arith.constant 0 : i32
    return %c0_i32, %c0_i32_0 : i32, i32
  }
  func.func @transform_5(%arg0: i32) -> (i32, i32) {
    %c0_i32 = arith.constant 0 : i32
    %c0_i32_0 = arith.constant 0 : i32
    %c0_i32_1 = arith.constant 0 : i32
    return %c0_i32, %c0_i32_0 : i32, i32
  }
  func.func @transform_6(%arg0: i32) -> (i32, i32) {
    %c0_i32 = arith.constant 0 : i32
    %c0_i32_0 = arith.constant 0 : i32
    %c0_i32_1 = arith.constant 0 : i32
    return %c0_i32, %c0_i32_0 : i32, i32
  }
  func.func @transform_7(%arg0: i32) -> (i32, i32) {
    %c0_i32 = arith.constant 0 : i32
    %c0_i32_0 = arith.constant 0 : i32
    %c0_i32_1 = arith.constant 0 : i32
    return %c0_i32, %c0_i32_0 : i32, i32
  }
  func.func @transform_8(%arg0: i32) -> (i32, i32) {
    %c0_i32 = arith.constant 0 : i32
    %c0_i32_0 = arith.constant 0 : i32
    %c0_i32_1 = arith.constant 0 : i32
    return %c0_i32, %c0_i32_0 : i32, i32
  }
  func.func @transform_9(%arg0: i32) -> (i32, i32) {
    %c0_i32 = arith.constant 0 : i32
    %c0_i32_0 = arith.constant 0 : i32
    %c0_i32_1 = arith.constant 0 : i32
    return %c0_i32, %c0_i32_0 : i32, i32
  }
  func.func @transform_10(%arg0: i32) -> (i32, i32) {
    %c0_i32 = arith.constant 0 : i32
    %c0_i32_0 = arith.constant 0 : i32
    %c0_i32_1 = arith.constant 0 : i32
    return %c0_i32, %c0_i32_0 : i32, i32
  }
  func.func @transform_11(%arg0: i32) -> (i32, i32, i32) {
    %c0_i32 = arith.constant 0 : i32
    %c0_i32_0 = arith.constant 0 : i32
    %c0_i32_1 = arith.constant 0 : i32
    %c0_i32_2 = arith.constant 0 : i32
    return %c0_i32, %c0_i32_0, %c0_i32_1 : i32, i32, i32
  }
  func.func @transform_12(%arg0: i32) -> (i32, i32, i32) {
    %c0_i32 = arith.constant 0 : i32
    %c0_i32_0 = arith.constant 0 : i32
    %c0_i32_1 = arith.constant 0 : i32
    return %arg0, %c0_i32, %c0_i32_0 : i32, i32, i32
  }
}

</mosaic_0001>

<bundles_post_ra>
// kernel: tpu_custom_call.1
= control target key start
LH: loop header
LB: loop body
LE: loop exit
PB: predicated region body
PF: predicated region fallthrough
CT: control target
= control target key end

     0   :  { %s2583_s0 = inlined_call_operand.hbm [shape: f32[2,16,256], index: 0, kind: input, shape index: {}]   ;;  %s2584_s1 = inlined_call_operand.vmem [shape: f32[16,144], index: 1, kind: input, shape index: {}]   ;;  %s2585_s2 = inlined_call_operand.vmem [shape: f32[16,1], index: 2, kind: input, shape index: {}]   ;;  %s2586_s3 = inlined_call_operand.vmem [shape: f32[16,1], index: 3, kind: input, shape index: {}]   ;;  %s2587_s4 = inlined_call_operand.vmem [shape: f32[16,1], index: 4, kind: input, shape index: {}]   ;;  %s2588_s5 = inlined_call_operand.hbm [shape: f32[16,16], index: 5, kind: input, shape index: {}]   ;;  %s2589_s6 = inlined_call_operand.vmem [shape: f32[16,144], index: 6, kind: input, shape index: {}]   ;;  %s2590_s7 = inlined_call_operand.vmem [shape: f32[16,1], index: 7, kind: input, shape index: {}]   ;;  %s2591_s8 = inlined_call_operand.vmem [shape: f32[16,1], index: 8, kind: input, shape index: {}]   ;;  %s2592_s9 = inlined_call_operand.vmem [shape: f32[16,1], index: 9, kind: input, shape index: {}]   ;;  %s2593_s10 = inlined_call_operand.hbm [shape: f32[16,16], index: 10, kind: input, shape index: {}]   ;;  %s2594_s11 = inlined_call_operand.vmem [shape: f32[9,1,256], index: 11, kind: input, shape index: {}]   ;;  %s2595_s12 = inlined_call_operand.hbm [shape: f32[2,16,256], index: 12, kind: output, shape index: {}]  }
   0x1   :  { %2603 = sst [smem:[#allocation16_spill]] %s2588_s5 }
   0x2   :  { %2604 = sst [smem:[#allocation17_spill]] %s2593_s10 }
   0x3   :  { %17 = vsyncpa [#allocation3], 0 }
   0x4   :  { %19 = vsyncpa [#allocation3 + $0x1], 0 }
   0x5   :  { %20 = vsyncpa [#allocation6], 0 }
   0x6   :  { %21 = vsyncpa [#allocation4], 0 }
   0x7   :  { %23 = vsyncpa [#allocation4 + $0x1], 0  ;;  %s1895_s21 = smov 0   ;;  %s1897_s22 = smov 0  }
   0x8   :  { %s1899_s23 = smov 0   ;;  %s1901_s24 = smov 0  }
   0x9 LB: > { %2605 = sst [smem:[#allocation12_spill]] %s1808_s23  ;;  %s1916_s25 = sadd.s32 4294967295, %s1812_s24   ;;  %s1812_s24 = sphi %s1901_s24, %s2620_s24   ;;  %s1808_s23 = sphi %s1899_s23, %s2622_s23   ;;  %s1804_s22 = sphi %s1897_s22, %s2624_s22   ;;  %s1800_s21 = sphi %s1895_s21, %s2623_s21  }
   0xa   : > { %s1501_s26 = sadd.s32 4294967294, %s1812_s24   ;;  %p49_p0 = scmp.ne.s32.totalorder %s1804_s22, %s1800_s21 }
   0xb   : > { %p50_p1 = scmp.eq.s32.totalorder %s1916_s25, 0  ;;  %p304_p2 = scmp.eq.s32.totalorder %s1916_s25, 1 }
   0xc   : > { %p310_p3 = scmp.eq.s32.totalorder %s1501_s26, 1  ;;  %p1502_p5 = scmp.ge.s32.totalorder %s1812_s24, 1 }
   0xd   : > { %p1925_p4 = por %p50_p1, %p49_p0  ;;  %p317_p7 = scmp.lt.s32.totalorder %s1812_s24, 3 }
   0xe   : > { %p1930_p6 = por %p310_p3, %p49_p0  ;;  %s2609_s5 = sld [smem:[#allocation16_spill]] }
   0xf   : > { %p1938_p8 = pnand %p1502_p5, %p317_p7  ;;  %s1814_s15 = smov [#allocation5]  }
  0x10   : > { %s2607_s28 = scalar_select %p1930_p6, 1, 0 }
  0x11   : > { %p1568_p9 = pneg %p1938_p8  ;;  %s342_s16 = sshll.u32 %s1814_s15, 4  ;;  %s343_s16 = int_to_ptr.vmem [resolvable:$true] %s342_s16 }
  0x12   : > { %2608 = sst [smem:[#allocation13_spill]] %s2607_s28  ;;  %s1815_s20 = smov 128  }
  0x13   : > { %p1569_p10 = pnand %p1568_p9, %p50_p1  ;;  %s2611_s10 = sld [smem:[#allocation17_spill]] }
  0x14   : > { %s340_s13 = sshll.u32 %s2609_s5, 4  ;;  %s1816_s26 = smov 8   ;;  %s341_s13 = int_to_ptr.hbm [resolvable:$true] %s340_s13 }
  0x15   : > { %1571 = dma.hbm_to_vmem [thread:$0]  (!%p1569_p10), %s341_s13, 256, %s343_s16, [#allocation6], %s1815_s20, %s1815_s20, %s1816_s26  }
  0x16   : > { %s1817_s29 = smov [#allocation7]   ;;  %s1951_s15 = sadd.s32 1, %s1812_s24  }
  0x17   : > { %s368_s30 = sshll.u32 %s1817_s29, 4  ;;  %2612 = sst [smem:[#allocation14_spill]] %s1951_s15  ;;  %s369_s30 = int_to_ptr.vmem [resolvable:$true] %s368_s30 }
  0x18   : > { %s36_s5 = sadd.s32 1, %s1808_s23  ;;  %s33_s28 = ssub.s32 %s1812_s24, %s1951_s15 }
  0x19   : > { %s366_s19 = sshll.u32 %s2611_s10, 4  ;;  %p43_p12 = scmp.ne.s32.totalorder %s1808_s23, %s1804_s22  ;;  %s367_s19 = int_to_ptr.hbm [resolvable:$true] %s366_s19 }
  0x1a   : > { %1574 = dma.hbm_to_vmem [thread:$0]  (!%p1569_p10), %s367_s19, 256, %s369_s30, [#allocation6], %s1815_s20, %s1815_s20, %s1816_s26  }
  0x1b   : > { %p34_p13 = scmp.eq.s32.totalorder %s33_s28, 0  ;;  %p44_p0 = scmp.eq.s32.totalorder %s1812_s24, 0 }
  0x1c   : > { %p1961_p3 = por %p304_p2, %p43_p12  ;;  %p1585_p5 = scmp.lt.s32.totalorder %s1812_s24, 2 }
  0x1d   : > { %s1967_s13 = scalar_select %p34_p13, %s1808_s23, %s36_s5  }
  0x1e   : > { %p45_p7 = por %p44_p0, %p43_p12  ;;  %s385_s16 = sand.u32 1, %s1808_s23  }
  0x1f   : > { %2614 = sst [smem:[#allocation15_spill]] %s1967_s13  ;;  %s1506_s18 = sshll.u32 %s385_s16, 5 }
  0x20   : > { %s1550_s19 = sshll.u32 %s1812_s24, 5  ;;  %s389_s30 = scalar_lea.vmem [#allocation2], %s1506_s18 }
  0x21   : > { %s394_s29 = scalar_lea.hbm %s2583_s0, %s1550_s19  ;;  %s397_s10 = sshll.u32 %s389_s30, 4  ;;  %s398_s10 = int_to_ptr.vmem [resolvable:$true] %s397_s10 }
  0x22   : > { %s395_s28 = sshll.u32 %s394_s29, 4  ;;  %p1974_p2 = pnand %p1585_p5, %p45_p7  ;;  %s396_s28 = int_to_ptr.hbm [resolvable:$true] %s395_s28 }
  0x23   : > { %s386_s5 = scalar_lea.sflag [#allocation3], %s385_s16  ;;  %s1712_s13 = sshra.s32 %s396_s28, 4  ;;  %s1713_s13 = int_to_ptr.hbm [resolvable:$true] %s1712_s13 }
  0x24   : > { %s1714_s23 = scalar_lea.hbm %s1713_s13, 32  ;;  %p1716_p10 = pneg %p1974_p2 }
  0x25   : > { %p1715_p9 = scmp.ne.s32.totalorder %s1713_s13, %s1714_s23  ;;  %s1719_s20 = scalar_lea.hbm %s2583_s0, 64 }
  0x26   : > { %p1720_p0 = scmp.lt.s32.totalorder %s1713_s13, %s2583_s0  ;;  %p1721_p5 = scmp.lt.s32.totalorder %s1719_s20, %s1714_s23 }
  0x27   : > { %p1717_p12 = pnand %p1716_p10, %p1715_p9 }
  0x28   : > { %p1722_p7 = por %p1721_p5, %p1720_p0 }
  0x29   : > { %p1718_p13 = pneg %p1717_p12 }
  0x2b   : > { %p1723_p11 = pnand %p1722_p7, %p1718_p13 }
  0x2d   : > { %1726 = shalt.err (!%p1723_p11)
}
  0x2e   : > { %s1818_s16 = smov 256   ;;  %s1819_s30 = smov 16  }
  0x2f   : > { %1578 = dma.hbm_to_vmem [thread:$0]  (!%p1974_p2), %s396_s28, 512, %s398_s10, %s386_s5, %s1818_s16, %s1818_s16, %s1819_s30  }
  0x30   : > { %409 = sbr.rel (%p1938_p8) target bundleno = 1847 (0x737), region = 68  ;;  %s1991_s19 = sand.u32 (!%p1938_p8), 1, %s1804_s22  }
  0x31   : > { %s2600_s13 = sshll.u32 (!%p1938_p8), %s1991_s19, 5  ;;  %s412_s23 = scalar_lea.sflag (!%p1938_p8), [#allocation3], %s1991_s19 }
  0x32   : > { %s1997_s18 = scalar_lea.vmem (!%p1938_p8), [#allocation2], %s2600_s13 }
  0x35   : > { %1787 = dma.done.wait (%p1925_p4), %s412_s23, 512  }
  0x36   : > { %1789 = vsyncadd (%p1925_p4), %s412_s23, 4294966784 }
  0x37   : > { %1791 = dma.done.wait (%p50_p1), [#allocation6], 512  }
  0x38   : > { %1793 = vsyncadd (%p50_p1), [#allocation6], 4294966784  ;;  %v2008_v0 = vld [vmem:[%s1997_s18 + $0x10] sm:$0xff]  ;;  %v2011_v1 = vld [vmem:[%s1997_s18] sm:$0xff]  ;;  %s1820_s10 = smov 112   ;;  %s1821_s27 = smov 113   ;;  %v494_v9 = vlaneseq }
  0x39   : > { %622 = vrot.lane.b32.xlu0 %v2008_v0, %s1820_s10  ;;  %620 = vrot.lane.b32.xlu1 %v2011_v1, %s1820_s10  ;;  %v2020_v2 = vld [vmem:[%s1997_s18 + $0x18] sm:$0xff]  ;;  %v2023_v3 = vld [vmem:[%s1997_s18 + $0x8] sm:$0xff]  ;;  %s1822_s14 = smov 127   ;;  %s1823_s15 = smov 1   ;;  %vm680_vm8 = vcmask 130048  }
  0x3a   : > { %600 = vrot.lane.b32.xlu2 %v2008_v0, %s1821_s27  ;;  %s1824_s28 = smov 15   ;;  %s1825_s5 = smov 16   ;;  %v1519_v10 = vld [vmem:[%s2594_s11 + $0xe] sm:$0x3]  ;;  %v2086_v11 = vand.u32 127, %v494_v9 }
  0x3b   : > { %s2601_s20 = smov 17   ;;  %s1827_s26 = smov 111   ;;  %v2089_v12 = vperm.slane %v1519_v10, 0  ;;  %v2091_v13 = vperm.slane %v1519_v10, 1  ;;  %v1518_v14 = vld [vmem:[%s2594_s11 + $0xc] sm:$0x3] }
  0x3c   : > { %vm628_vm0 = vcmp.lt.s32.totalorder %v2086_v11, 112  ;;  %vm606_vm1 = vcmp.lt.s32.totalorder %v2086_v11, 113  ;;  %v2107_v24 = vperm.slane %v1518_v14, 0  ;;  %v2109_v25 = vperm.slane %v1518_v14, 1  ;;  %v1517_v38 = vld [vmem:[%s2594_s11 + $0xa] sm:$0x3] }
  0x3d   : > { %vm584_vm2 = vcmp.lt.s32.totalorder %v2086_v11, 127  ;;  %v2129_v40 = vperm.slane %v1517_v38, 0  ;;  %v2131_v41 = vperm.slane %v1517_v38, 1  ;;  %v1516_v50 = vld [vmem:[%s2594_s11 + $0x6] sm:$0x3]  ;;  %vm562_vm3 = vcmp.lt.s32.totalorder %v2086_v11, 1 }
  0x3e   : > { %v2149_v54 = vperm.slane %v1516_v50, 0  ;;  %v2151_v55 = vperm.slane %v1516_v50, 1  ;;  %v1515_v62 = vld [vmem:[%s2594_s11 + $0x4] sm:$0x3]  ;;  %vm540_vm4 = vcmp.lt.s32.totalorder %v2086_v11, 15  ;;  %vm518_vm5 = vcmp.lt.s32.totalorder %v2086_v11, 16 }
  0x3f   : > { %vm496_vm6 = vcmp.lt.s32.totalorder %v2086_v11, 17  ;;  %vm650_vm7 = vcmp.lt.s32.totalorder %v2086_v11, 111  ;;  %s1551_s16 = sshll.u32 %s1916_s25, 5  ;;  %s2617_s25 = sshll.u32 %s1991_s19, 5 }
  0x41   : > { %626 = vrot.lane.b32.xlu0 %v2020_v2, %s1820_s10  ;;  %624 = vrot.lane.b32.xlu1 %v2023_v3, %s1820_s10 }
  0x42   : > { %604 = vrot.lane.b32.xlu2 %v2020_v2, %s1821_s27 }
  0x49   : > { %598 = vrot.lane.b32.xlu0 %v2011_v1, %s1821_s27  ;;  %602 = vrot.lane.b32.xlu1 %v2023_v3, %s1821_s27 }
  0x4a   : > { %578 = vrot.lane.b32.xlu2 %v2008_v0, %s1822_s14 }
  0x51   : > { %582 = vrot.lane.b32.xlu0 %v2020_v2, %s1822_s14  ;;  %576 = vrot.lane.b32.xlu1 %v2011_v1, %s1822_s14 }
  0x52   : > { %580 = vrot.lane.b32.xlu2 %v2023_v3, %s1822_s14 }
  0x59   : > { %556 = vrot.lane.b32.xlu0 %v2008_v0, %s1823_s15  ;;  %560 = vrot.lane.b32.xlu1 %v2020_v2, %s1823_s15 }
  0x5a   : > { %554 = vrot.lane.b32.xlu2 %v2011_v1, %s1823_s15 }
  0x61   : > { %558 = vrot.lane.b32.xlu0 %v2023_v3, %s1823_s15  ;;  %534 = vrot.lane.b32.xlu1 %v2008_v0, %s1824_s28 }
  0x62   : > { %538 = vrot.lane.b32.xlu2 %v2020_v2, %s1824_s28 }
  0x69   : > { %532 = vrot.lane.b32.xlu0 %v2011_v1, %s1824_s28  ;;  %536 = vrot.lane.b32.xlu1 %v2023_v3, %s1824_s28 }
  0x6a   : > { %512 = vrot.lane.b32.xlu2 %v2008_v0, %s1825_s5 }
  0x71   : > { %516 = vrot.lane.b32.xlu0 %v2020_v2, %s1825_s5  ;;  %510 = vrot.lane.b32.xlu1 %v2011_v1, %s1825_s5 }
  0x72   : > { %514 = vrot.lane.b32.xlu2 %v2023_v3, %s1825_s5 }
  0x79   : > { %488 = vrot.lane.b32.xlu0 %v2008_v0, %s2601_s20  ;;  %492 = vrot.lane.b32.xlu1 %v2020_v2, %s2601_s20 }
  0x7a   : > { %486 = vrot.lane.b32.xlu2 %v2011_v1, %s2601_s20 }
  0x81   : > { %490 = vrot.lane.b32.xlu0 %v2023_v3, %s2601_s20  ;;  %644 = vrot.lane.b32.xlu1 %v2008_v0, %s1827_s26 }
  0x82   : > { %648 = vrot.lane.b32.xlu2 %v2020_v2, %s1827_s26 }
  0x89   : > { %642 = vrot.lane.b32.xlu0 %v2011_v1, %s1827_s26  ;;  %646 = vrot.lane.b32.xlu1 %v2023_v3, %s1827_s26 }
  0x94   : > { %v601_v4 = vpop.permute.xlu2 %600 }
  0x9c   : > { %v605_v5 = vpop.permute.xlu2 %604 }
  0x9d   : > { %v608_v26 = vsel %vm606_vm1, %v601_v4, %v605_v5  ;;  %v610_v27 = vsel %vm606_vm1, %v605_v5, %v601_v4  ;;  %v2167_v4 = vperm.slane %v1515_v62, 0 }
  0x9e   : > { %v618_v30 = vmul.f32 %v2107_v24, %v608_v26  ;;  %v619_v31 = vmul.f32 %v2109_v25, %v610_v27 }
  0xa4   : > { %v579_v6 = vpop.permute.xlu2 %578 }
  0xab   : > { %v623_v7 = vpop.permute.xlu0 %622  ;;  %v621_v8 = vpop.permute.xlu1 %620 }
  0xac   : > { %v581_v21 = vpop.permute.xlu2 %580 }
  0xb3   : > { %v627_v15 = vpop.permute.xlu0 %626  ;;  %v625_v16 = vpop.permute.xlu1 %624 }
  0xb4   : > { %v629_v17 = vsel %vm628_vm0, %v621_v8, %v625_v16  ;;  %v631_v18 = vsel %vm628_vm0, %v625_v16, %v621_v8  ;;  %v630_v19 = vsel %vm628_vm0, %v623_v7, %v627_v15  ;;  %v632_v20 = vsel %vm628_vm0, %v627_v15, %v623_v7  ;;  %v555_v39 = vpop.permute.xlu2 %554 }
  0xb5   : > { %v640_v22 = vmul.f32 %v2089_v12, %v630_v19  ;;  %v641_v23 = vmul.f32 %v2091_v13, %v632_v20  ;;  %v638_v28 = vmul.f32 %v2089_v12, %v629_v17  ;;  %v639_v29 = vmul.f32 %v2091_v13, %v631_v18 }
  0xb7   : > { %687 = vmatpush.msra.mxu0 %v640_v22  ;;  %733 = vmatpush.msra.mxu2 %v641_v23  ;;  %v1514_v22 = vld [vmem:[%s2594_s11 + $0x2] sm:$0x3] }
  0xb8   : > { %v2193_v23 = vperm.slane %v1514_v22, 0  ;;  %v2195_v26 = vperm.slane %v1514_v22, 1 }
  0xb9   : > { %688 = vmatpush.msra.mxu0 %v638_v28  ;;  %734 = vmatpush.msra.mxu2 %v639_v29 }
  0xbb   : > { %v599_v32 = vpop.permute.xlu0 %598  ;;  %689 = vmatpush.msra.mxu0 %v618_v30  ;;  %735 = vmatpush.msra.mxu2 %v619_v31  ;;  %v603_v33 = vpop.permute.xlu1 %602 }
  0xbc   : > { %v607_v34 = vsel %vm606_vm1, %v599_v32, %v603_v33  ;;  %v609_v35 = vsel %vm606_vm1, %v603_v33, %v599_v32  ;;  %v539_v53 = vpop.permute.xlu2 %538 }
  0xbd   : > { %v616_v36 = vmul.f32 %v2107_v24, %v607_v34  ;;  %v617_v37 = vmul.f32 %v2109_v25, %v609_v35  ;;  %v471_v35 = vld [vmem:[%s2594_s11] sm:$0x3] }
  0xbf   : > { %690 = vmatpush.msra.mxu0 %v616_v36  ;;  %736 = vmatpush.msra.mxu2 %v617_v37 }
  0xc3   : > { %v583_v42 = vpop.permute.xlu0 %582  ;;  %v577_v43 = vpop.permute.xlu1 %576 }
  0xc4   : > { %v586_v44 = vsel %vm584_vm2, %v579_v6, %v583_v42  ;;  %v588_v45 = vsel %vm584_vm2, %v583_v42, %v579_v6  ;;  %v585_v46 = vsel %vm584_vm2, %v577_v43, %v581_v21  ;;  %v587_v47 = vsel %vm584_vm2, %v581_v21, %v577_v43  ;;  %v513_v63 = vpop.permute.xlu2 %512  ;;  %v669_v42 = vld [vmem:[%s2585_s2 + $0x8] sm:$0xff] }
  0xc5   : > { %v596_v48 = vmul.f32 %v2129_v40, %v586_v44  ;;  %v597_v49 = vmul.f32 %v2131_v41, %v588_v45  ;;  %v594_v51 = vmul.f32 %v2129_v40, %v585_v46  ;;  %v595_v52 = vmul.f32 %v2131_v41, %v587_v47 }
  0xc6   : > { %v2219_v43 = vperm.slane %v471_v35, 0  ;;  %v2221_v44 = vperm.slane %v471_v35, 1  ;;  %v1828_v45 = vmov 0  }
  0xc7   : > { %691 = vmatpush.msra.mxu0 %v596_v48  ;;  %737 = vmatpush.msra.mxu2 %v597_v49 }
  0xc8   : > { %1638 = vset.pattern.permute.xlu0 %v1828_v45  ;;  %1637 = vset.pattern.permute.xlu2 %v1828_v45 }
  0xc9   : > { %692 = vmatpush.msra.mxu0 %v594_v51  ;;  %738 = vmatpush.msra.mxu2 %v595_v52  ;;  %v1520_v52 = vld [vmem:[%s2594_s11 + $0x10] sm:$0x3] }
  0xca   : > { %677 = vperm.xlu2 %1637, %v669_v42   ;;  %1639 = vset.pattern.permute.xlu1 %v1828_v45 }
  0xcb   : > { %v557_v56 = vpop.permute.xlu0 %556  ;;  %693 = vmatpush.msra.mxu0 %v2008_v0  ;;  %739 = vmatpush.msra.mxu2 %v2020_v2  ;;  %v561_v57 = vpop.permute.xlu1 %560 }
  0xcc   : > { %v564_v58 = vsel %vm562_vm3, %v557_v56, %v561_v57  ;;  %v566_v59 = vsel %vm562_vm3, %v561_v57, %v557_v56  ;;  %v515_v21 = vpop.permute.xlu2 %514  ;;  %v2236_v57 = vperm.slane %v1520_v52, 0 }
  0xcd   : > { %694 = vmatpush.msra.mxu0 %v2011_v1  ;;  %740 = vmatpush.msra.mxu2 %v2023_v3  ;;  %v574_v60 = vmul.f32 %v2149_v54, %v566_v59  ;;  %v575_v61 = vmul.f32 %v2151_v55, %v564_v58  ;;  %v2169_v1 = vperm.slane %v1515_v62, 1  ;;  %v2238_v58 = vperm.slane %v1520_v52, 1 }
  0xcf   : > { %695 = vmatpush.msra.mxu0 %v574_v60  ;;  %741 = vmatpush.msra.mxu2 %v575_v61 }
  0xd3   : > { %v559_v0 = vpop.permute.xlu0 %558  ;;  %v535_v2 = vpop.permute.xlu1 %534 }
  0xd4   : > { %v563_v3 = vsel %vm562_vm3, %v555_v39, %v559_v0  ;;  %v565_v5 = vsel %vm562_vm3, %v559_v0, %v555_v39  ;;  %v542_v6 = vsel %vm540_vm4, %v535_v2, %v539_v53  ;;  %v544_v7 = vsel %vm540_vm4, %v539_v53, %v535_v2  ;;  %v487_v38 = vpop.permute.xlu2 %486  ;;  %v668_v39 = vld [vmem:[%s2585_s2] sm:$0xff]  ;;  %v946_v53 = vld [vmem:[%s2587_s4 + $0x8] sm:$0xff] }
  0xd5   : > { %v572_v8 = vmul.f32 %v2149_v54, %v565_v5  ;;  %v573_v9 = vmul.f32 %v2151_v55, %v563_v3  ;;  %v552_v10 = vmul.f32 %v2167_v4, %v544_v7  ;;  %v553_v14 = vmul.f32 %v2169_v1, %v542_v6  ;;  %672 = vperm.xlu0 %1638, %v668_v39   ;;  %v664_v7 = vld [vmem:[%s2584_s1] sm:$0xff] }
  0xd6   : > { %v779_v39 = vld [vmem:[#allocation5] sm:$0xff] }
  0xd7   : > { %696 = vmatpush.msra.mxu0 %v572_v8  ;;  %742 = vmatpush.msra.mxu2 %v573_v9 }
  0xd9   : > { %697 = vmatpush.msra.mxu0 %v552_v10  ;;  %743 = vmatpush.msra.mxu2 %v553_v14 }
  0xdb   : > { %v533_v15 = vpop.permute.xlu0 %532  ;;  %v537_v16 = vpop.permute.xlu1 %536 }
  0xdc   : > { %v541_v17 = vsel %vm540_vm4, %v533_v15, %v537_v16  ;;  %v543_v18 = vsel %vm540_vm4, %v537_v16, %v533_v15  ;;  %v649_v56 = vpop.permute.xlu2 %648 }
  0xdd   : > { %v550_v19 = vmul.f32 %v2167_v4, %v543_v18  ;;  %v551_v20 = vmul.f32 %v2169_v1, %v541_v17  ;;  %954 = vperm.xlu0 %1638, %v946_v53   ;;  %v665_v17 = vld [vmem:[%s2584_s1 + $0x8] sm:$0xff]  ;;  %v666_v18 = vld [vmem:[%s2584_s1 + $0x10] sm:$0xff] }
  0xdf   : > { %698 = vmatpush.msra.mxu0 %v550_v19  ;;  %744 = vmatpush.msra.mxu2 %v551_v20  ;;  %v667_v19 = vld [vmem:[%s2584_s1 + $0x18] sm:$0xff] }
  0xe3   : > { %v517_v27 = vpop.permute.xlu0 %516  ;;  %v511_v28 = vpop.permute.xlu1 %510 }
  0xe4   : > { %v520_v29 = vsel %vm518_vm5, %v513_v63, %v517_v27  ;;  %v522_v30 = vsel %vm518_vm5, %v517_v27, %v513_v63  ;;  %v519_v31 = vsel %vm518_vm5, %v511_v28, %v515_v21  ;;  %v521_v32 = vsel %vm518_vm5, %v515_v21, %v511_v28 }
  0xe5   : > { %v530_v33 = vmul.f32 %v2193_v23, %v522_v30  ;;  %v531_v34 = vmul.f32 %v2195_v26, %v520_v29  ;;  %v528_v36 = vmul.f32 %v2193_v23, %v521_v32  ;;  %v529_v37 = vmul.f32 %v2195_v26, %v519_v31 }
  0xe7   : > { %699 = vmatpush.msra.mxu0 %v530_v33  ;;  %745 = vmatpush.msra.mxu2 %v531_v34 }
  0xe9   : > { %700 = vmatpush.msra.mxu0 %v528_v36  ;;  %746 = vmatpush.msra.mxu2 %v529_v37 }
  0xeb   : > { %v489_v46 = vpop.permute.xlu0 %488  ;;  %v493_v47 = vpop.permute.xlu1 %492 }
  0xec   : > { %v498_v48 = vsel %vm496_vm6, %v489_v46, %v493_v47  ;;  %v500_v49 = vsel %vm496_vm6, %v493_v47, %v489_v46  ;;  %v780_v47 = vld [vmem:[#allocation5 + $0x8] sm:$0xff] }
  0xed   : > { %v508_v50 = vmul.f32 %v2219_v43, %v500_v49  ;;  %v509_v51 = vmul.f32 %v2221_v44, %v498_v48 }
  0xef   : > { %701 = vmatpush.msra.mxu0 %v508_v50  ;;  %747 = vmatpush.msra.mxu2 %v509_v51 }
  0xf3   : > { %v491_v59 = vpop.permute.xlu0 %490  ;;  %v645_v60 = vpop.permute.xlu1 %644 }
  0xf4   : > { %v497_v61 = vsel %vm496_vm6, %v487_v38, %v491_v59  ;;  %v499_v62 = vsel %vm496_vm6, %v491_v59, %v487_v38  ;;  %v652_v63 = vsel %vm650_vm7, %v645_v60, %v649_v56  ;;  %v654_v0 = vsel %vm650_vm7, %v649_v56, %v645_v60  ;;  %v929_v56 = vld [vmem:[%s2586_s3] sm:$0xff] }
  0xf5   : > { %v506_v2 = vmul.f32 %v2219_v43, %v499_v62  ;;  %v662_v3 = vmul.f32 %v2236_v57, %v652_v63  ;;  %v507_v5 = vmul.f32 %v2221_v44, %v497_v61  ;;  %v663_v6 = vmul.f32 %v2238_v58, %v654_v0 }
  0xf7   : > { %702 = vmatpush.msra.mxu0 %v506_v2  ;;  %724 = vmatpush.msra.mxu1 %v662_v3 }
  0xf8   : > { %748 = vmatpush.msra.mxu2 %v507_v5  ;;  %770 = vmatpush.msra.mxu3 %v663_v6 }
  0xf9   : > { %749 = vmatmul.f32.vlgmr.msra.gmra.mxu2 %v664_v7  ;;  %703 = vmatmul.f32.vlgmr.msra.gmra.mxu0 %v664_v7 }
  0xfb   : > { %v643_v8 = vpop.permute.xlu0 %642  ;;  %v647_v9 = vpop.permute.xlu1 %646 }
  0xfc   : > { %v651_v10 = vsel %vm650_vm7, %v643_v8, %v647_v9  ;;  %v653_v14 = vsel %vm650_vm7, %v647_v9, %v643_v8  ;;  %v930_v9 = vld [vmem:[%s2586_s3 + $0x8] sm:$0xff] }
  0xfd   : > { %v660_v15 = vmul.f32 %v2236_v57, %v651_v10  ;;  %v661_v16 = vmul.f32 %v2238_v58, %v653_v14  ;;  %v945_v10 = vld [vmem:[%s2587_s4] sm:$0xff] }
  0xff   : > { %725 = vmatpush.msra.mxu1 %v660_v15  ;;  %771 = vmatpush.msra.mxu3 %v661_v16 }
 0x100   : > { %1523 = vmatmul.msk.f32.vlgmr.msra.gmra.mxu3 %vm680_vm8, %v665_v17  ;;  %1521 = vmatmul.msk.f32.vlgmr.msra.gmra.mxu1 %vm680_vm8, %v665_v17 }
 0x101   : > { %752 = vmatmul.f32.gmra.mxu2 %v666_v18  ;;  %706 = vmatmul.f32.gmra.mxu0 %v666_v18 }
 0x108   : > { %1524 = vmatmul.msk.f32.gmra.mxu3 %vm680_vm8, %v667_v19  ;;  %1522 = vmatmul.msk.f32.gmra.mxu1 %vm680_vm8, %v667_v19 }
 0x124   : > { %v678_v27 = vpop.permute.xlu2 %677 }
 0x147   : > { %v673_v29 = vpop.permute.xlu0 %672 }
 0x176   : > { %v704_v20 = vpop.f32.mrf.mxu0 }
 0x177   : > { %v705_v30 = vadd.f32 %v704_v20, %v673_v29 }
 0x17c   : > { %v750_v21 = vpop.f32.mrf.mxu2 }
 0x17d   : > { %v727_v22 = vpop.f32.mrf.mxu1  ;;  %v751_v38 = vadd.f32 %v750_v21, %v673_v29  ;;  %v955_v21 = vpop.permute.xlu0 %954 }
 0x17e   : > { %v707_v28 = vpop.f32.mrf.mxu0  ;;  %v728_v36 = vadd.f32 %v727_v22, %v705_v30 }
 0x17f   : > { %v708_v31 = vadd.f32 %v707_v28, %v678_v27 }
 0x183   : > { %v773_v32 = vpop.f32.mrf.mxu3 }
 0x184   : > { %v753_v34 = vpop.f32.mrf.mxu2  ;;  %v774_v46 = vadd.f32 %v773_v32, %v751_v38 }
 0x185   : > { %v730_v33 = vpop.f32.mrf.mxu1  ;;  %v754_v37 = vadd.f32 %v753_v34, %v678_v27 }
 0x186   : > { %v731_v35 = vadd.f32 %v730_v33, %v708_v31 }
 0x188   : > { %801 = vmatpush.msrb.mxu1 %v731_v35 }
 0x18a   : > { %802 = vmatpush.msrb.mxu1 %v728_v36 }
 0x18b   : > { %v776_v42 = vpop.f32.mrf.mxu3  ;;  %1525 = vmatmul.msk.f32.vlgmr.msrb.gmra.mxu1 %vm680_vm8, %v779_v39 }
 0x18c   : > { %v777_v45 = vadd.f32 %v776_v42, %v754_v37 }
 0x18e   : > { %824 = vmatpush.msrb.mxu3 %v777_v45 }
 0x190   : > { %825 = vmatpush.msrb.mxu3 %v774_v46 }
 0x191   : > { %1527 = vmatmul.msk.f32.vlgmr.msrb.gmra.mxu3 %vm680_vm8, %v779_v39 }
 0x193   : > { %1526 = vmatmul.msk.f32.gmra.mxu1 %vm680_vm8, %v780_v47 }
 0x199   : > { %1528 = vmatmul.msk.f32.gmra.mxu3 %vm680_vm8, %v780_v47 }
 0x208   : > { %v804_v48 = vpop.f32.mrf.mxu1 }
 0x210   : > { %v807_v51 = vpop.f32.mrf.mxu1 }
 0x214   : > { %v827_v49 = vpop.f32.mrf.mxu3 }
 0x215   : > { %v833_v50 = vadd.f32 %v827_v49, %v804_v48 }
 0x217   : > { %834 = vadd.xlane.f32.xlu2 %v833_v50 }
 0x21c   : > { %v830_v52 = vpop.f32.mrf.mxu3 }
 0x21d   : > { %v836_v53 = vadd.f32 %v830_v52, %v807_v51 }
 0x21f   : > { %837 = vadd.xlane.f32.xlu1 %v836_v53 }
 0x22f   : > { %933 = vperm.xlu2 %1637, %v929_v56  }
 0x238   : > { %938 = vperm.xlu1 %1639, %v930_v9  }
 0x240   : > { %949 = vperm.xlu1 %1639, %v945_v10  }
 0x28a   : > { %v835_v59 = vpop.xlane.xlu2 %834 }
 0x28b   : > { %v839_v60 = vmul.f32 0.001953125, %v835_v59 }
 0x28d   : > { %v841_v63 = vsub.f32 %v728_v36, %v839_v60  ;;  %v842_v0 = vsub.f32 %v774_v46, %v839_v60 }
 0x28f   : > { %v845_v7 = vmul.f32 %v841_v63, %v841_v63  ;;  %v846_v8 = vmul.f32 %v842_v0, %v842_v0 }
 0x292   : > { %v838_v61 = vpop.xlane.xlu1 %837  ;;  %v934_v20 = vpop.permute.xlu2 %933 }
 0x293   : > { %v840_v62 = vmul.f32 0.001953125, %v838_v61 }
 0x295   : > { %v2281_v2 = vsub.f32 %v731_v35, %v840_v62  ;;  %v2283_v3 = vsub.f32 %v777_v45, %v840_v62 }
 0x297   : > { %v847_v5 = vmul.f32 %v2281_v2, %v2281_v2  ;;  %v848_v6 = vmul.f32 %v2283_v3, %v2283_v3 }
 0x299   : > { %863 = vmatpush.msra.mxu1 %v847_v5  ;;  %886 = vmatpush.msra.mxu3 %v848_v6 }
 0x29b   : > { %864 = vmatpush.msra.mxu1 %v845_v7  ;;  %887 = vmatpush.msra.mxu3 %v846_v8  ;;  %v1093_v7 = vld [vmem:[%s2590_s7] sm:$0xff] }
 0x29c   : > { %1531 = vmatmul.msk.f32.vlgmr.msra.gmra.mxu3 %vm680_vm8, %v779_v39  ;;  %1529 = vmatmul.msk.f32.vlgmr.msra.gmra.mxu1 %vm680_vm8, %v779_v39 }
 0x2a4   : > { %1532 = vmatmul.msk.f32.gmra.mxu3 %vm680_vm8, %v780_v47  ;;  %1530 = vmatmul.msk.f32.gmra.mxu1 %vm680_vm8, %v780_v47 }
 0x2aa   : > { %v939_v36 = vpop.permute.xlu1 %938 }
 0x2b2   : > { %v950_v49 = vpop.permute.xlu1 %949 }
 0x319   : > { %v866_v14 = vpop.f32.mrf.mxu1 }
 0x31f   : > { %v889_v15 = vpop.f32.mrf.mxu3 }
 0x320   : > { %v895_v16 = vadd.f32 %v889_v15, %v866_v14 }
 0x321   : > { %v869_v17 = vpop.f32.mrf.mxu1 }
 0x322   : > { %896 = vadd.xlane.f32.xlu2 %v895_v16 }
 0x327   : > { %v892_v18 = vpop.f32.mrf.mxu3 }
 0x328   : > { %v898_v19 = vadd.f32 %v892_v18, %v869_v17 }
 0x32a   : > { %899 = vadd.xlane.f32.xlu0 %v898_v19 }
 0x395   : > { %v897_v22 = vpop.xlane.xlu2 %896 }
 0x396   : > { %v901_v27 = vmul.f32 0.001953125, %v897_v22 }
 0x398   : > { %v903_v28 = vadd.f32 1e-05, %v901_v27 }
 0x39a   : > { %1640 = vrsqrt.f32 %v903_v28  ;;  %vm911_vm10 = vweird.f32 %v903_v28 }
 0x39d   : > { %v900_v29 = vpop.xlane.xlu0 %899 }
 0x39e   : > { %v902_v31 = vmul.f32 0.001953125, %v900_v29 }
 0x3a0   : > { %v1641_v30 = vpop.eup %1640  ;;  %v904_v34 = vadd.f32 1e-05, %v902_v31 }
 0x3a1   : > { %v906_v32 = vmul.f32 %v1641_v30, %v903_v28  ;;  %vm912_vm9 = vweird.f32 %v1641_v30 }
 0x3a2   : > { %1642 = vrsqrt.f32 %v904_v34  ;;  %vm913_vm11 = vmor %vm911_vm10, %vm912_vm9  ;;  %vm921_vm12 = vweird.f32 %v904_v34 }
 0x3a3   : > { %v907_v33 = vmul.f32 %v1641_v30, %v906_v32 }
 0x3a5   : > { %v908_v35 = vmul.f32 0.5, %v907_v33 }
 0x3a7   : > { %v909_v37 = vsub.f32 1.5, %v908_v35 }
 0x3a8   : > { %v1643_v46 = vpop.eup %1642 }
 0x3a9   : > { %v910_v38 = vmul.f32 %v1641_v30, %v909_v37  ;;  %v916_v52 = vmul.f32 %v1643_v46, %v904_v34  ;;  %vm922_vm13 = vweird.f32 %v1643_v46 }
 0x3aa   : > { %vm923_vm14 = vmor %vm921_vm12, %vm922_vm13 }
 0x3ab   : > { %v914_v39 = vsel %vm913_vm11, %v1641_v30, %v910_v38  ;;  %v917_v53 = vmul.f32 %v1643_v46, %v916_v52 }
 0x3ac   : > { %v925_v42 = vmul.f32 %v914_v39, %v841_v63  ;;  %v926_v45 = vmul.f32 %v914_v39, %v842_v0 }
 0x3ad   : > { %v918_v56 = vmul.f32 0.5, %v917_v53 }
 0x3ae   : > { %v941_v47 = vmul.f32 %v934_v20, %v925_v42  ;;  %v942_v48 = vmul.f32 %v934_v20, %v926_v45 }
 0x3af   : > { %v919_v59 = vsub.f32 1.5, %v918_v56 }
 0x3b0   : > { %v2299_v50 = vadd.f32 %v950_v49, %v941_v47  ;;  %v2301_v51 = vadd.f32 %v950_v49, %v942_v48 }
 0x3b1   : > { %v920_v60 = vmul.f32 %v1643_v46, %v919_v59 }
 0x3b2   : > { %1045 = vrot.lane.b32.xlu1 %v2301_v51, %s1821_s27  ;;  %1061 = vrot.lane.b32.xlu2 %v2301_v51, %s1820_s10 }
 0x3b3   : > { %1057 = vrot.lane.b32.xlu0 %v2299_v50, %s1820_s10  ;;  %v924_v61 = vsel %vm923_vm14, %v1643_v46, %v920_v60 }
 0x3b4   : > { %v927_v62 = vmul.f32 %v924_v61, %v2281_v2  ;;  %v928_v0 = vmul.f32 %v924_v61, %v2283_v3  ;;  %v1094_v3 = vld [vmem:[%s2590_s7 + $0x8] sm:$0xff] }
 0x3b6   : > { %v943_v63 = vmul.f32 %v939_v36, %v927_v62  ;;  %v944_v2 = vmul.f32 %v939_v36, %v928_v0 }
 0x3b8   : > { %v2329_v5 = vadd.f32 %v955_v21, %v943_v63  ;;  %v2337_v6 = vadd.f32 %v955_v21, %v944_v2 }
 0x3ba   : > { %1025 = vrot.lane.b32.xlu1 %v2299_v50, %s1822_s14  ;;  %1041 = vrot.lane.b32.xlu2 %v2299_v50, %s1821_s27 }
 0x3bb   : > { %1029 = vrot.lane.b32.xlu0 %v2301_v51, %s1822_s14 }
 0x3c2   : > { %1009 = vrot.lane.b32.xlu1 %v2299_v50, %s1823_s15  ;;  %1073 = vrot.lane.b32.xlu2 %v2299_v50, %s1827_s26 }
 0x3c3   : > { %1013 = vrot.lane.b32.xlu0 %v2301_v51, %s1823_s15 }
 0x3ca   : > { %1077 = vrot.lane.b32.xlu1 %v2301_v51, %s1827_s26  ;;  %981 = vrot.lane.b32.xlu2 %v2301_v51, %s1825_s5 }
 0x3cb   : > { %997 = vrot.lane.b32.xlu0 %v2301_v51, %s1824_s28 }
 0x3d2   : > { %993 = vrot.lane.b32.xlu1 %v2299_v50, %s1824_s28  ;;  %1059 = vrot.lane.b32.xlu2 %v2329_v5, %s1820_s10 }
 0x3d3   : > { %977 = vrot.lane.b32.xlu0 %v2299_v50, %s1825_s5 }
 0x3da   : > { %1063 = vrot.lane.b32.xlu1 %v2337_v6, %s1820_s10  ;;  %1031 = vrot.lane.b32.xlu2 %v2337_v6, %s1822_s14  ;;  %s2616_s10 = smov 17  }
 0x3db   : > { %1047 = vrot.lane.b32.xlu0 %v2337_v6, %s1821_s27 }
 0x3e2   : > { %1043 = vrot.lane.b32.xlu1 %v2329_v5, %s1821_s27  ;;  %1011 = vrot.lane.b32.xlu2 %v2329_v5, %s1823_s15  ;;  %s466_s27 = scalar_lea.vmem [#allocation8], %s2617_s25 }
 0x3e3   : > { %1027 = vrot.lane.b32.xlu0 %v2329_v5, %s1822_s14  ;;  %s1406_s14 = sshll.u32 %s466_s27, 4  ;;  %s1407_s14 = int_to_ptr.vmem [resolvable:$true] %s1406_s14 }
 0x3ea   : > { %1015 = vrot.lane.b32.xlu1 %v2337_v6, %s1823_s15  ;;  %1079 = vrot.lane.b32.xlu2 %v2337_v6, %s1827_s26 }
 0x3eb   : > { %1075 = vrot.lane.b32.xlu0 %v2329_v5, %s1827_s26 }
 0x3f2   : > { %983 = vrot.lane.b32.xlu1 %v2337_v6, %s1825_s5  ;;  %999 = vrot.lane.b32.xlu2 %v2337_v6, %s1824_s28 }
 0x3f3   : > { %995 = vrot.lane.b32.xlu0 %v2329_v5, %s1824_s28  ;;  %s1394_s28 = scalar_lea.sflag [#allocation4], %s1991_s19 }
 0x3fa   : > { %963 = vrot.lane.b32.xlu1 %v2329_v5, %s2616_s10  ;;  %979 = vrot.lane.b32.xlu2 %v2329_v5, %s1825_s5 }
 0x3fb   : > { %967 = vrot.lane.b32.xlu0 %v2337_v6, %s2616_s10 }
 0x402   : > { %965 = vrot.lane.b32.xlu1 %v2301_v51, %s2616_s10  ;;  %961 = vrot.lane.b32.xlu2 %v2299_v50, %s2616_s10  ;;  %s1405_s10 = scalar_lea.hbm %s2595_s12, %s1551_s16  ;;  %s1762_s16 = scalar_lea.hbm %s2595_s12, 64 }
 0x403   : > { %1102 = vperm.xlu0 %1638, %v1094_v3   ;;  %s1408_s15 = sshll.u32 %s1405_s10, 4  ;;  %s1409_s15 = int_to_ptr.hbm [resolvable:$true] %s1408_s15 }
 0x404   : > { %s1756_s26 = sshra.s32 %s1409_s15, 4  ;;  %s1757_s26 = int_to_ptr.hbm [resolvable:$true] %s1756_s26 }
 0x405   : > { %s1758_s13 = scalar_lea.hbm %s1757_s26, 32  ;;  %p1763_p11 = scmp.lt.s32.totalorder %s1757_s26, %s2595_s12 }
 0x406   : > { %p1759_p1 = scmp.ne.s32.totalorder %s1757_s26, %s1758_s13  ;;  %p1764_p2 = scmp.lt.s32.totalorder %s1762_s16, %s1758_s13 }
 0x408   : > { %p1760_p4 = pnand %p1759_p1, %p1961_p3  ;;  %p1765_p9 = por %p1764_p2, %p1763_p11 }
 0x40a   : > { %1097 = vperm.xlu2 %1637, %v1093_v7   ;;  %p1761_p8 = pneg %p1760_p4 }
 0x40c   : > { %v1062_v8 = vpop.permute.xlu2 %1061  ;;  %p1766_p10 = pnand %p1765_p9, %p1761_p8 }
 0x414   : > { %v1042_v9 = vpop.permute.xlu2 %1041 }
 0x41c   : > { %v2379_v10 = vpop.permute.xlu2 %1073 }
 0x424   : > { %v1046_v14 = vpop.permute.xlu1 %1045  ;;  %v2381_v16 = vpop.permute.xlu2 %981 }
 0x425   : > { %v1058_v15 = vpop.permute.xlu0 %1057  ;;  %v1049_v48 = vsel %vm606_vm1, %v1042_v9, %v1046_v14  ;;  %v1051_v49 = vsel %vm606_vm1, %v1046_v14, %v1042_v9 }
 0x426   : > { %v1065_v33 = vsel %vm628_vm0, %v1058_v15, %v1062_v8  ;;  %v1067_v34 = vsel %vm628_vm0, %v1062_v8, %v1058_v15  ;;  %v1054_v61 = vmul.f32 %v1051_v49, %v2109_v25  ;;  %v1053_v62 = vmul.f32 %v1049_v48, %v2107_v24 }
 0x427   : > { %v1070_v42 = vmul.f32 %v1067_v34, %v2091_v13  ;;  %v1069_v45 = vmul.f32 %v1065_v33, %v2089_v12 }
 0x42c   : > { %v1026_v17 = vpop.permute.xlu1 %1025  ;;  %v1060_v20 = vpop.permute.xlu2 %1059 }
 0x42d   : > { %v1030_v18 = vpop.permute.xlu0 %1029 }
 0x42e   : > { %v1033_v63 = vsel %vm584_vm2, %v1026_v17, %v1030_v18  ;;  %v1035_v0 = vsel %vm584_vm2, %v1030_v18, %v1026_v17 }
 0x42f   : > { %v1038_v7 = vmul.f32 %v1035_v0, %v2131_v41 }
 0x434   : > { %v2383_v19 = vpop.permute.xlu1 %1009  ;;  %v1032_v28 = vpop.permute.xlu2 %1031 }
 0x435   : > { %v2385_v21 = vpop.permute.xlu0 %1013 }
 0x43c   : > { %v1078_v22 = vpop.permute.xlu1 %1077  ;;  %v1012_v31 = vpop.permute.xlu2 %1011 }
 0x43d   : > { %v2387_v27 = vpop.permute.xlu0 %997  ;;  %v1081_v14 = vsel %vm650_vm7, %v2379_v10, %v1078_v22 }
 0x444   : > { %v2389_v29 = vpop.permute.xlu1 %993  ;;  %v1080_v46 = vpop.permute.xlu2 %1079 }
 0x445   : > { %v2391_v30 = vpop.permute.xlu0 %977  ;;  %v1001_v33 = vsel %vm540_vm4, %v2389_v29, %v2387_v27 }
 0x44c   : > { %v1064_v32 = vpop.permute.xlu1 %1063 }
 0x44d   : > { %v1066_v35 = vsel %vm628_vm0, %v1060_v20, %v1064_v32  ;;  %v1068_v36 = vsel %vm628_vm0, %v1064_v32, %v1060_v20  ;;  %v1048_v37 = vpop.permute.xlu0 %1047  ;;  %v1019_v20 = vsel %vm562_vm3, %v2385_v21, %v2383_v19  ;;  %v1085_v32 = vmul.f32 %v1081_v14, %v2236_v57 }
 0x44e   : > { %v1072_v38 = vmul.f32 %v1068_v36, %v2091_v13  ;;  %v1071_v39 = vmul.f32 %v1066_v35, %v2089_v12 }
 0x450   : > { %1111 = vmatpush.msrb.mxu0 %v1071_v39  ;;  %1157 = vmatpush.msrb.mxu1 %v1072_v38 }
 0x452   : > { %1112 = vmatpush.msrb.mxu0 %v1069_v45  ;;  %1158 = vmatpush.msrb.mxu1 %v1070_v42  ;;  %v985_v42 = vsel %vm518_vm5, %v2391_v30, %v2381_v16  ;;  %v987_v45 = vsel %vm518_vm5, %v2381_v16, %v2391_v30 }
 0x453   : > { %v990_v48 = vmul.f32 %v985_v42, %v2195_v26  ;;  %v989_v49 = vmul.f32 %v987_v45, %v2193_v23 }
 0x454   : > { %v1044_v47 = vpop.permute.xlu1 %1043 }
 0x455   : > { %v1050_v52 = vsel %vm606_vm1, %v1044_v47, %v1048_v37  ;;  %v1052_v13 = vsel %vm606_vm1, %v1048_v37, %v1044_v47  ;;  %v1028_v53 = vpop.permute.xlu0 %1027 }
 0x456   : > { %v1056_v56 = vmul.f32 %v1052_v13, %v2109_v25  ;;  %v1055_v12 = vmul.f32 %v1050_v52, %v2107_v24  ;;  %v1034_v59 = vsel %vm584_vm2, %v1028_v53, %v1032_v28  ;;  %v1036_v60 = vsel %vm584_vm2, %v1032_v28, %v1028_v53  ;;  %v1000_v24 = vpop.permute.xlu2 %999 }
 0x457   : > { %v1040_v2 = vmul.f32 %v1036_v60, %v2131_v41  ;;  %v1039_v3 = vmul.f32 %v1034_v59, %v2129_v40  ;;  %v1037_v25 = vmul.f32 %v1033_v63, %v2129_v40  ;;  %v1083_v28 = vsel %vm650_vm7, %v1078_v22, %v2379_v10  ;;  %v1092_v10 = vld [vmem:[%s2589_s6 + $0x18] sm:$0xff]  ;;  %v1089_v60 = vld [vmem:[%s2589_s6] sm:$0xff] }
 0x458   : > { %1113 = vmatpush.msrb.mxu0 %v1055_v12  ;;  %1159 = vmatpush.msrb.mxu1 %v1056_v56 }
 0x45a   : > { %1114 = vmatpush.msrb.mxu0 %v1053_v62  ;;  %1160 = vmatpush.msrb.mxu1 %v1054_v61  ;;  %v1091_v61 = vld [vmem:[%s2589_s6 + $0x10] sm:$0xff] }
 0x45c   : > { %v1016_v8 = vpop.permute.xlu1 %1015  ;;  %1115 = vmatpush.msrb.mxu0 %v1039_v3  ;;  %1161 = vmatpush.msrb.mxu1 %v1040_v2 }
 0x45d   : > { %v1076_v9 = vpop.permute.xlu0 %1075  ;;  %v1020_v17 = vsel %vm562_vm3, %v1016_v8, %v1012_v31  ;;  %v1018_v40 = vsel %vm562_vm3, %v1012_v31, %v1016_v8 }
 0x45e   : > { %v1082_v15 = vsel %vm650_vm7, %v1076_v9, %v1080_v46  ;;  %1116 = vmatpush.msrb.mxu0 %v1037_v25  ;;  %1162 = vmatpush.msrb.mxu1 %v1038_v7  ;;  %v1084_v41 = vsel %vm650_vm7, %v1080_v46, %v1076_v9  ;;  %v1023_v31 = vmul.f32 %v1020_v17, %v2149_v54  ;;  %v980_v35 = vpop.permute.xlu2 %979 }
 0x45f   : > { %v1087_v18 = vmul.f32 %v1082_v15, %v2236_v57  ;;  %v1024_v22 = vmul.f32 %v1018_v40, %v2151_v55  ;;  %v1086_v57 = vmul.f32 %v1083_v28, %v2238_v58  ;;  %v1203_v40 = vld [vmem:[#allocation7] sm:$0xff] }
 0x460   : > { %1117 = vmatpush.msrb.mxu0 %v2329_v5  ;;  %1163 = vmatpush.msrb.mxu1 %v2337_v6  ;;  %v1017_v5 = vsel %vm562_vm3, %v2383_v19, %v2385_v21  ;;  %v1088_v6 = vmul.f32 %v1084_v41, %v2238_v58  ;;  %v1021_v21 = vmul.f32 %v1019_v20, %v2149_v54  ;;  %v1204_v20 = vld [vmem:[#allocation7 + $0x8] sm:$0xff] }
 0x461   : > { %1148 = vmatpush.msrb.mxu2 %v1087_v18  ;;  %1552 = vmatpush.msrb.mxu3 %v1087_v18  ;;  %v1003_v54 = vsel %vm540_vm4, %v2387_v27, %v2389_v29  ;;  %v1006_v29 = vmul.f32 %v1001_v33, %v2169_v1 }
 0x462   : > { %1118 = vmatpush.msrb.mxu0 %v2299_v50  ;;  %1164 = vmatpush.msrb.mxu1 %v2301_v51  ;;  %v1090_v50 = vld [vmem:[%s2589_s6 + $0x8] sm:$0xff]  ;;  %v1022_v51 = vmul.f32 %v1017_v5, %v2151_v55  ;;  %v1005_v39 = vmul.f32 %v1003_v54, %v2167_v4 }
 0x463   : > { %1149 = vmatpush.msrb.mxu2 %v1085_v32  ;;  %1553 = vmatpush.msrb.mxu3 %v1085_v32 }
 0x464   : > { %v984_v19 = vpop.permute.xlu1 %983  ;;  %1119 = vmatpush.msrb.mxu0 %v1023_v31  ;;  %1165 = vmatpush.msrb.mxu1 %v1024_v22  ;;  %v1353_v22 = vld [vmem:[%s2591_s8] sm:$0xff] }
 0x465   : > { %1194 = vmatpush.msra.mxu3 %v1088_v6  ;;  %v996_v34 = vpop.permute.xlu0 %995  ;;  %1533 = vmatmul.msk.f32.vlgmr.msrb.gmra.mxu2 %vm680_vm8, %v1090_v50  ;;  %v986_v38 = vsel %vm518_vm5, %v980_v35, %v984_v19  ;;  %v988_v27 = vsel %vm518_vm5, %v984_v19, %v980_v35 }
 0x466   : > { %1534 = vmatmul.msk.f32.vlgmr.msrb.gmra.mxu3 %vm680_vm8, %v1092_v10  ;;  %v1002_v58 = vsel %vm540_vm4, %v996_v34, %v1000_v24  ;;  %v1004_v55 = vsel %vm540_vm4, %v1000_v24, %v996_v34  ;;  %1120 = vmatpush.msrb.mxu0 %v1021_v21  ;;  %v992_v46 = vmul.f32 %v986_v38, %v2195_v26  ;;  %v962_v26 = vpop.permute.xlu2 %961 }
 0x467   : > { %1195 = vmatpush.msra.mxu3 %v1086_v57  ;;  %v1008_v36 = vmul.f32 %v1002_v58, %v2169_v1  ;;  %1166 = vmatpush.msrb.mxu1 %v1022_v51  ;;  %v1007_v37 = vmul.f32 %v1004_v55, %v2167_v4  ;;  %v991_v1 = vmul.f32 %v988_v27, %v2193_v23  ;;  %v1370_v57 = vld [vmem:[%s2592_s9 + $0x8] sm:$0xff] }
 0x469   : > { %1121 = vmatpush.msrb.mxu0 %v1007_v37  ;;  %1167 = vmatpush.msrb.mxu1 %v1008_v36 }
 0x46b   : > { %1122 = vmatpush.msrb.mxu0 %v1005_v39  ;;  %1168 = vmatpush.msrb.mxu1 %v1006_v29 }
 0x46c   : > { %v964_v47 = vpop.permute.xlu1 %963 }
 0x46d   : > { %1123 = vmatpush.msrb.mxu0 %v991_v1  ;;  %1169 = vmatpush.msrb.mxu1 %v992_v46  ;;  %v968_v4 = vpop.permute.xlu0 %967  ;;  %v1354_v46 = vld [vmem:[%s2591_s8 + $0x8] sm:$0xff]  ;;  %v1369_v1 = vld [vmem:[%s2592_s9] sm:$0xff] }
 0x46e   : > { %v970_v52 = vsel %vm496_vm6, %v964_v47, %v968_v4  ;;  %v972_v16 = vsel %vm496_vm6, %v968_v4, %v964_v47  ;;  %1535 = vmatmul.msk.f32.vlgmr.msra.gmra.mxu3 %vm680_vm8, %v1090_v50  ;;  %v1098_v63 = vpop.permute.xlu2 %1097 }
 0x46f   : > { %v976_v30 = vmul.f32 %v970_v52, %v2221_v44  ;;  %1124 = vmatpush.msrb.mxu0 %v989_v49  ;;  %1170 = vmatpush.msrb.mxu1 %v990_v48  ;;  %v975_v13 = vmul.f32 %v972_v16, %v2219_v43 }
 0x471   : > { %1125 = vmatpush.msrb.mxu0 %v975_v13  ;;  %1171 = vmatpush.msrb.mxu1 %v976_v30 }
 0x474   : > { %v966_v53 = vpop.permute.xlu1 %965 }
 0x475   : > { %v969_v23 = vsel %vm496_vm6, %v962_v26, %v966_v53  ;;  %v971_v56 = vsel %vm496_vm6, %v966_v53, %v962_v26  ;;  %v1103_v0 = vpop.permute.xlu0 %1102 }
 0x476   : > { %v974_v12 = vmul.f32 %v969_v23, %v2221_v44  ;;  %v973_v59 = vmul.f32 %v971_v56, %v2219_v43  ;;  %1536 = vmatmul.msk.f32.gmra.mxu3 %vm680_vm8, %v1092_v10 }
 0x478   : > { %1126 = vmatpush.msrb.mxu0 %v973_v59  ;;  %1172 = vmatpush.msrb.mxu1 %v974_v12 }
 0x479   : > { %1127 = vmatmul.f32.vlgmr.msrb.gmra.mxu0 %v1089_v60  ;;  %1173 = vmatmul.f32.vlgmr.msrb.gmra.mxu1 %v1089_v60 }
 0x481   : > { %1130 = vmatmul.f32.gmra.mxu0 %v1091_v61  ;;  %1176 = vmatmul.f32.gmra.mxu1 %v1091_v61 }
 0x4e8   : > { %v1151_v14 = vpop.f32.mrf.mxu2 }
 0x4e9   : > { %v1154_v11 = vpop.f32.mrf.mxu3 }
 0x4f1   : > { %v1197_v44 = vpop.f32.mrf.mxu3 }
 0x4f6   : > { %v1128_v62 = vpop.f32.mrf.mxu0  ;;  %v1174_v43 = vpop.f32.mrf.mxu1 }
 0x4f7   : > { %v1129_v8 = vadd.f32 %v1128_v62, %v1098_v63  ;;  %v1175_v25 = vadd.f32 %v1174_v43, %v1098_v63 }
 0x4f9   : > { %v1200_v2 = vpop.f32.mrf.mxu3  ;;  %v1152_v41 = vadd.f32 %v1151_v14, %v1129_v8  ;;  %v1198_v18 = vadd.f32 %v1197_v44, %v1175_v25 }
 0x4fe   : > { %v1131_v3 = vpop.f32.mrf.mxu0  ;;  %v1177_v7 = vpop.f32.mrf.mxu1 }
 0x4ff   : > { %v1132_v24 = vadd.f32 %v1131_v3, %v1103_v0  ;;  %v1178_v9 = vadd.f32 %v1177_v7, %v1103_v0 }
 0x501   : > { %v1155_v15 = vadd.f32 %v1154_v11, %v1132_v24  ;;  %v1201_v17 = vadd.f32 %v1200_v2, %v1178_v9 }
 0x503   : > { %1225 = vmatpush.msra.mxu2 %v1155_v15  ;;  %1248 = vmatpush.msrb.mxu3 %v1201_v17 }
 0x505   : > { %1226 = vmatpush.msra.mxu2 %v1152_v41  ;;  %1249 = vmatpush.msrb.mxu3 %v1198_v18 }
 0x506   : > { %1537 = vmatmul.msk.f32.vlgmr.msra.gmra.mxu2 %vm680_vm8, %v1203_v40  ;;  %1539 = vmatmul.msk.f32.vlgmr.msrb.gmra.mxu3 %vm680_vm8, %v1203_v40 }
 0x50e   : > { %1538 = vmatmul.msk.f32.gmra.mxu2 %vm680_vm8, %v1204_v20  ;;  %1540 = vmatmul.msk.f32.gmra.mxu3 %vm680_vm8, %v1204_v20 }
 0x589   : > { %v1228_v28 = vpop.f32.mrf.mxu2  ;;  %v1251_v32 = vpop.f32.mrf.mxu3 }
 0x58a   : > { %v1257_v5 = vadd.f32 %v1251_v32, %v1228_v28  ;;  %v1648_v28 = vld [vmem:[%s1997_s18] sm:$0xff] }
 0x58c   : > { %1258 = vadd.xlane.f32.xlu0 %v1257_v5  ;;  %v1649_v5 = vld [vmem:[%s1997_s18 + $0x8] sm:$0xff] }
 0x591   : > { %v1231_v6 = vpop.f32.mrf.mxu2  ;;  %v1254_v31 = vpop.f32.mrf.mxu3 }
 0x592   : > { %v1260_v10 = vadd.f32 %v1254_v31, %v1231_v6  ;;  %v1650_v31 = vld [vmem:[%s1997_s18 + $0x10] sm:$0xff] }
 0x594   : > { %1261 = vadd.xlane.f32.xlu1 %v1260_v10 }
 0x5a0   : > { %1357 = vperm.xlu0 %1638, %v1353_v22   ;;  %v1651_v22 = vld [vmem:[%s1997_s18 + $0x18] sm:$0xff] }
 0x5a8   : > { %1378 = vperm.xlu0 %1638, %v1370_v57  }
 0x5ff   : > { %v1259_v19 = vpop.xlane.xlu0 %1258 }
 0x600   : > { %v1263_v21 = vmul.f32 0.001953125, %v1259_v19 }
 0x602   : > { %v1265_v33 = vsub.f32 %v1152_v41, %v1263_v21  ;;  %v1266_v58 = vsub.f32 %v1198_v18, %v1263_v21 }
 0x604   : > { %v1269_v36 = vmul.f32 %v1265_v33, %v1265_v33  ;;  %v1270_v37 = vmul.f32 %v1266_v58, %v1266_v58 }
 0x607   : > { %v1262_v50 = vpop.xlane.xlu1 %1261 }
 0x608   : > { %v1264_v51 = vmul.f32 0.001953125, %v1262_v50 }
 0x60a   : > { %v1267_v34 = vsub.f32 %v1155_v15, %v1264_v51  ;;  %v1268_v54 = vsub.f32 %v1201_v17, %v1264_v51 }
 0x60c   : > { %v1271_v55 = vmul.f32 %v1267_v34, %v1267_v34  ;;  %v1272_v35 = vmul.f32 %v1268_v54, %v1268_v54 }
 0x60e   : > { %1287 = vmatpush.msra.mxu0 %v1271_v55  ;;  %1554 = vmatpush.msra.mxu1 %v1271_v55 }
 0x60f   : > { %1310 = vmatpush.msrb.mxu2 %v1272_v35 }
 0x610   : > { %1288 = vmatpush.msra.mxu0 %v1269_v36  ;;  %1555 = vmatpush.msra.mxu1 %v1269_v36 }
 0x611   : > { %1311 = vmatpush.msrb.mxu2 %v1270_v37  ;;  %1541 = vmatmul.msk.f32.vlgmr.msra.gmra.mxu0 %vm680_vm8, %v1203_v40 }
 0x612   : > { %1543 = vmatmul.msk.f32.vlgmr.msrb.gmra.mxu2 %vm680_vm8, %v1203_v40  ;;  %1542 = vmatmul.msk.f32.vlgmr.msra.gmra.mxu1 %vm680_vm8, %v1204_v20  ;;  %v1358_v61 = vpop.permute.xlu0 %1357 }
 0x61a   : > { %1544 = vmatmul.msk.f32.gmra.mxu2 %vm680_vm8, %v1204_v20  ;;  %v1379_v18 = vpop.permute.xlu0 %1378 }
 0x68e   : > { %v1290_v38 = vpop.f32.mrf.mxu0 }
 0x68f   : > { %v1293_v39 = vpop.f32.mrf.mxu1 }
 0x695   : > { %v1313_v27 = vpop.f32.mrf.mxu2 }
 0x696   : > { %v1319_v29 = vadd.f32 %v1313_v27, %v1290_v38 }
 0x698   : > { %1320 = vadd.xlane.f32.xlu2 %v1319_v29 }
 0x69d   : > { %v1316_v42 = vpop.f32.mrf.mxu2 }
 0x69e   : > { %v1322_v45 = vadd.f32 %v1316_v42, %v1293_v39 }
 0x6a0   : > { %1323 = vadd.xlane.f32.xlu1 %v1322_v45 }
 0x6b0   : > { %1362 = vperm.xlu2 %1637, %v1354_v46  }
 0x6b9   : > { %1373 = vperm.xlu1 %1639, %v1369_v1  }
 0x70b   : > { %v1321_v47 = vpop.xlane.xlu2 %1320 }
 0x70c   : > { %v1325_v48 = vmul.f32 0.001953125, %v1321_v47 }
 0x70e   : > { %v1327_v4 = vadd.f32 1e-05, %v1325_v48 }
 0x710   : > { %1644 = vrsqrt.f32 %v1327_v4  ;;  %vm1335_vm0 = vweird.f32 %v1327_v4 }
 0x713   : > { %v1324_v49 = vpop.xlane.xlu1 %1323  ;;  %v1363_v24 = vpop.permute.xlu2 %1362 }
 0x714   : > { %v1326_v52 = vmul.f32 0.001953125, %v1324_v49 }
 0x716   : > { %v1645_v16 = vpop.eup %1644  ;;  %v1328_v30 = vadd.f32 1e-05, %v1326_v52 }
 0x717   : > { %v1330_v13 = vmul.f32 %v1645_v16, %v1327_v4  ;;  %vm1336_vm15 = vweird.f32 %v1645_v16 }
 0x718   : > { %1646 = vrsqrt.f32 %v1328_v30  ;;  %vm1337_vm1 = vmor %vm1335_vm0, %vm1336_vm15  ;;  %vm1345_vm3 = vweird.f32 %v1328_v30 }
 0x719   : > { %v1331_v26 = vmul.f32 %v1645_v16, %v1330_v13 }
 0x71b   : > { %v1332_v53 = vmul.f32 0.5, %v1331_v26 }
 0x71d   : > { %v1333_v23 = vsub.f32 1.5, %v1332_v53 }
 0x71e   : > { %v1647_v56 = vpop.eup %1646 }
 0x71f   : > { %v1340_v12 = vmul.f32 %v1647_v56, %v1328_v30  ;;  %v1334_v59 = vmul.f32 %v1645_v16, %v1333_v23  ;;  %vm1346_vm2 = vweird.f32 %v1647_v56 }
 0x720   : > { %vm1347_vm4 = vmor %vm1345_vm3, %vm1346_vm2 }
 0x721   : > { %v1341_v60 = vmul.f32 %v1647_v56, %v1340_v12  ;;  %v1338_v44 = vsel %vm1337_vm1, %v1645_v16, %v1334_v59 }
 0x722   : > { %v1349_v43 = vmul.f32 %v1338_v44, %v1265_v33  ;;  %v1350_v63 = vmul.f32 %v1338_v44, %v1266_v58 }
 0x723   : > { %v1342_v11 = vmul.f32 0.5, %v1341_v60 }
 0x724   : > { %v1365_v8 = vmul.f32 %v1358_v61, %v1349_v43  ;;  %v1366_v25 = vmul.f32 %v1358_v61, %v1350_v63 }
 0x725   : > { %v1343_v62 = vsub.f32 1.5, %v1342_v11 }
 0x727   : > { %v1344_v0 = vmul.f32 %v1647_v56, %v1343_v62 }
 0x729   : > { %v1348_v2 = vsel %vm1347_vm4, %v1647_v56, %v1344_v0 }
 0x72a   : > { %v1351_v3 = vmul.f32 %v1348_v2, %v1267_v34  ;;  %v1352_v7 = vmul.f32 %v1348_v2, %v1268_v54 }
 0x72b   : > { %v1374_v9 = vpop.permute.xlu1 %1373 }
 0x72c   : > { %v1367_v14 = vmul.f32 %v1363_v24, %v1351_v3  ;;  %v1368_v15 = vmul.f32 %v1363_v24, %v1352_v7  ;;  %v1381_v17 = vadd.f32 %v1374_v9, %v1365_v8  ;;  %v1382_v41 = vadd.f32 %v1374_v9, %v1366_v25 }
 0x72e   : > { %v1383_v40 = vadd.f32 %v1379_v18, %v1367_v14  ;;  %v1384_v20 = vadd.f32 %v1379_v18, %v1368_v15  ;;  %v1385_v32 = vadd.f32 %v1648_v28, %v1381_v17  ;;  %v1386_v6 = vadd.f32 %v1649_v5, %v1382_v41 }
 0x730   : > { %v1387_v10 = vadd.f32 %v1650_v31, %v1383_v40  ;;  %v1388_v57 = vadd.f32 %v1651_v22, %v1384_v20  ;;  %1389 = vst [vmem:[%s466_s27] sm:$0xff] %v1385_v32 }
 0x731   : > { %1390 = vst [vmem:[%s466_s27 + $0x8] sm:$0xff] %v1386_v6 }
 0x732   : > { %1391 = vst [vmem:[%s466_s27 + $0x10] sm:$0xff] %v1387_v10 }
 0x733   : > { %1392 = vst [vmem:[%s466_s27 + $0x18] sm:$0xff] %v1388_v57 }
 0x734   : > { %1769 = shalt.err (!%p1766_p10)
}
 0x735   : > { %s1829_s19 = smov 256  }
 0x736   : > { %1566 = dma.vmem_to_hbm [thread:$0]  (%p1961_p3), %s1407_s14, 512, %s1409_s15, %s1394_s28, %s1829_s19, %s1829_s19, %s1825_s5  }
 0x737 PF: > { %s1423_s10 = sand.u32 1, %s1800_s21   ;;  %p2619_p12 = scmp.ge.s32.totalorder %s1812_s24, 2 }
 0x738   : > { %s1424_s25 = scalar_lea.sflag [#allocation4], %s1423_s10 }
 0x739   : > { %p1580_p13 = pnand %p2619_p12, %p1930_p6 }
 0x73b   : > { %p1581_p0 = pneg %p1580_p13 }
 0x73d   : > { %1795 = dma.done.wait (%p1581_p0), %s1424_s25, 512  }
 0x73e   : > { %1797 = vsyncadd (%p1581_p0), %s1424_s25, 4294966784  ;;  %s2620_s24 = sld [smem:[#allocation14_spill]]  ;;  %s2623_s21 = smov %s1804_s22 }
 0x73f   : > { %s2621_s27 = sld [smem:[#allocation12_spill]] }
 0x740   : > { %s2622_s23 = sld [smem:[#allocation15_spill]] }
 0x744   : > { %p26_p5 = scmp.ge.s32.totalorder %s2620_s24, 4  }
 0x745   : > { %s2624_s22 = smov %s2621_s27 }
 0x746   :  { %28 = sbr.rel (!%p26_p5) target bundleno = 9 (0x9), region = 128 }
 0x74b   :  { %1430 = vsyncpa [#allocation3], 1 }
 0x74c   :  { %1432 = vsyncpa [#allocation3 + $0x1], 1 }
 0x74d   :  { %1433 = vsyncpa [#allocation6], 1 }
 0x74e   :  { %1434 = vsyncpa [#allocation4], 1 }
 0x74f   :  { %1436 = vsyncpa [#allocation4 + $0x1], 1 }

</bundles_post_ra>
